<compile_context>
chip_gen: v7x
topology: tpu7x:2x2x1
jax: 0.10.0
libtpu: 0.0.40
codegen_flags: <defaults>
</compile_context>

<pallas_src>
import functools

import jax
import jax.numpy as jnp
from jax import lax
from jax.experimental import pallas as pl
from jax.experimental.pallas import tpu as pltpu


def _lstm_fc_kernel(gx_ref, w_hh_ref, w_fc_ref, b_fc_ref, out_ref,
                    h_scr, c_scr, *, t_chunk, batch_pad, hidden_pad, unroll):
    """One time-chunk of the LSTM recurrence (+ final FC on the last chunk).

    gx_ref:   (Tc*Bp, 4*Hp) f32  pre-projected gate inputs (x@W_ih + b), time-major
    w_hh_ref: (Hp, 4*Hp)     matmul dtype (bf16 by default)
    w_fc_ref: (Hp, Op)       matmul dtype
    b_fc_ref: (1, Op)        f32
    out_ref:  (Bp, Op)       f32
    h_scr/c_scr: (Bp, Hp)    f32 recurrent state carried across grid steps.
    """
    Tc, Bp, Hp = t_chunk, batch_pad, hidden_pad
    G = 4 * Hp

    @pl.when(pl.program_id(0) == 0)
    def _init():
        h_scr[...] = jnp.zeros_like(h_scr)
        c_scr[...] = jnp.zeros_like(c_scr)

    w_hh = w_hh_ref[...]                                   # resident, bf16

    # Gate-lane masks/scales, hoisted out of the serial loop (no per-iter
    # broadcast_in_dim).  Gate order [i, f, g, o]; 'g' lanes use plain tanh,
    # sigmoid lanes use sigmoid(x) = 0.5*(tanh(0.5*x) + 1).
    lane = lax.broadcasted_iota(jnp.int32, (Bp, G), 1)
    use_tanh = (lane >= 2 * Hp) & (lane < 3 * Hp)
    pre_scale = jnp.where(use_tanh, 1.0, 0.5).astype(jnp.float32)
    post_bias = jnp.where(use_tanh, 0.0, 0.5).astype(jnp.float32)

    def step(t, carry):
        h, c = carry                                       # f32 (Bp, Hp)
        row = pl.multiple_of(t * Bp, Bp)                   # Bp % 8 == 0 -> aligned
        gates = gx_ref[pl.ds(row, Bp), :] + jnp.dot(
            h.astype(w_hh.dtype), w_hh, preferred_element_type=jnp.float32)
        # Single EUP tanh over the full (Bp, 4Hp) tile.
        th = jnp.tanh(gates * pre_scale)
        act = th * pre_scale + post_bias
        i_g = act[:, 0 * Hp:1 * Hp]
        f_g = act[:, 1 * Hp:2 * Hp]
        g_g = act[:, 2 * Hp:3 * Hp]
        o_g = act[:, 3 * Hp:4 * Hp]
        c_new = f_g * c + i_g * g_g
        h_new = o_g * jnp.tanh(c_new)
        return (h_new, c_new)

    h_fin, c_fin = lax.fori_loop(0, Tc, step, (h_scr[...], c_scr[...]),
                                 unroll=unroll)
    h_scr[...] = h_fin
    c_scr[...] = c_fin

    @pl.when(pl.program_id(0) == pl.num_programs(0) - 1)
    def _finalize():
        out_ref[...] = (jnp.dot(h_fin.astype(w_fc_ref.dtype), w_fc_ref[...],
                                preferred_element_type=jnp.float32)
                        + b_fc_ref[...])


def _pad_gate_cols(w, h, h_pad):
    """(rows, 4*h) -> (rows, 4*h_pad), zero-padding each gate block."""
    rows = w.shape[0]
    w4 = w.reshape(rows, 4, h)
    return (jnp.zeros((rows, 4, h_pad), w.dtype).at[:, :, :h].set(w4)
            .reshape(rows, 4 * h_pad))


def rnn_model_forward(input_ids, params, *, time_chunk=None,
                      matmul_dtype=jnp.bfloat16):
    """input_ids: (B, T) int32.  Returns (B, output_size) float32."""
    emb = params["embedding"]          # (V, E) f32
    w_ih = params["w_ih"]              # (E, 4H)
    w_hh = params["w_hh"]              # (H, 4H)
    b = params["b"]                    # (1, 4H) = b_ih + b_hh
    w_fc = params["w_fc"]              # (H, O)
    b_fc = params["b_fc"]              # (1, O)

    B, T = input_ids.shape
    H = w_hh.shape[0]
    O = w_fc.shape[1]

    Hp = max(128, -(-H // 128) * 128)          # every gate = full 128-lane vreg
    Op = max(128, -(-O // 128) * 128)          # lane-dense output tile
    Bp = max(8, -(-B // 8) * 8)                # sublane-aligned batch

    # Time chunking: largest divisor of T not exceeding requested chunk.
    if time_chunk is None:
        time_chunk = T
    Tc = max(d for d in range(1, min(time_chunk, T) + 1) if T % d == 0)
    n_chunks = T // Tc

    # ---- Pre-projected, gate-padded embedding table (one-time XLA work). ----
    # emb_proj[v] = emb[v] @ W_ih + b ; padded gate columns are exactly zero.
    w_ih_p = _pad_gate_cols(w_ih, H, Hp)                              # (E, 4Hp)
    b_p = _pad_gate_cols(b, H, Hp)                                    # (1, 4Hp)
    emb_proj = emb @ w_ih_p + b_p                                     # (V, 4Hp) f32

    # Time-major gather of pre-projected rows (transpose fused into indices).
    if Bp > B:
        input_ids = jnp.pad(input_ids, ((0, Bp - B), (0, 0)))
    ids_tm = jnp.transpose(input_ids).reshape(-1)                     # (T*Bp,)
    gx = jnp.take(emb_proj, ids_tm, axis=0)                           # (T*Bp, 4Hp) f32

    # ---- Padded weights (recurrent / FC operands in MXU-native dtype). ----
    w_hh_rows = jnp.zeros((Hp, 4 * H), w_hh.dtype).at[:H].set(w_hh)
    w_hh_p = _pad_gate_cols(w_hh_rows, H, Hp).astype(matmul_dtype)    # (Hp, 4Hp)
    w_fc_p = (jnp.zeros((Hp, Op), matmul_dtype)
              .at[:H, :O].set(w_fc.astype(matmul_dtype)))             # (Hp, Op)
    b_fc_p = jnp.zeros((1, Op), jnp.float32).at[:, :O].set(b_fc)      # (1, Op)

    itemsize = jnp.dtype(matmul_dtype).itemsize

    # ---- VMEM budget (gx chunk double-buffered + weights + out + scratch). ----
    gx_block_bytes = Tc * Bp * 4 * Hp * 4
    weight_bytes = (w_hh_p.size + w_fc_p.size) * itemsize + b_fc_p.size * 4
    out_bytes = Bp * Op * 4
    scratch_bytes = 2 * Bp * Hp * 4
    vmem_bytes = min(2 * (gx_block_bytes + weight_bytes + out_bytes)
                     + scratch_bytes + (4 << 20), 64 << 20)

    flops = 2 * T * Bp * Hp * 4 * Hp + 2 * Bp * Hp * Op
    transcendentals = T * Bp * 5 * Hp          # one tanh(4Hp) + one tanh(Hp)/step
    bytes_accessed = (gx.size * 4 + weight_bytes + out_bytes)

    kernel = functools.partial(
        _lstm_fc_kernel, t_chunk=Tc, batch_pad=Bp, hidden_pad=Hp,
        unroll=True if Tc <= 16 else 8)

    out_padded = pl.pallas_call(
        kernel,
        out_shape=jax.ShapeDtypeStruct((Bp, Op), jnp.float32),
        grid_spec=pltpu.PrefetchScalarGridSpec(
            num_scalar_prefetch=0,
            grid=(n_chunks,),
            in_specs=[
                pl.BlockSpec((Tc * Bp, 4 * Hp), lambda i: (i, 0)),   # gx chunk
                pl.BlockSpec((Hp, 4 * Hp), lambda i: (0, 0)),        # W_hh
                pl.BlockSpec((Hp, Op), lambda i: (0, 0)),            # W_fc
                pl.BlockSpec((1, Op), lambda i: (0, 0)),             # b_fc
            ],
            out_specs=pl.BlockSpec((Bp, Op), lambda i: (0, 0)),
            scratch_shapes=[
                pltpu.VMEM((Bp, Hp), jnp.float32),   # h carry
                pltpu.VMEM((Bp, Hp), jnp.float32),   # c carry
            ],
        ),
        compiler_params=pltpu.CompilerParams(
            dimension_semantics=("arbitrary",),
            vmem_limit_bytes=int(vmem_bytes)),
        cost_estimate=pl.CostEstimate(
            flops=int(flops),
            transcendentals=int(transcendentals),
            bytes_accessed=int(bytes_accessed)),
    )(gx, w_hh_p, w_fc_p, b_fc_p)

    return out_padded[:B, :O]


def rnn_model_reference(input_ids, params):
    """Pure-JAX f32 reference with PyTorch LSTM semantics."""
    emb = params["embedding"]
    w_ih, w_hh, b = params["w_ih"], params["w_hh"], params["b"]
    w_fc, b_fc = params["w_fc"], params["b_fc"]
    H = w_hh.shape[0]

    x = jnp.take(emb, input_ids, axis=0)            # (B, T, E)
    B, T, _ = x.shape
    h = jnp.zeros((B, H), jnp.float32)
    c = jnp.zeros((B, H), jnp.float32)

    def step(carry, x_t):
        h, c = carry
        gates = x_t @ w_ih + h @ w_hh + b
        i_g = jax.nn.sigmoid(gates[:, 0 * H:1 * H])
        f_g = jax.nn.sigmoid(gates[:, 1 * H:2 * H])
        g_g = jnp.tanh(gates[:, 2 * H:3 * H])
        o_g = jax.nn.sigmoid(gates[:, 3 * H:4 * H])
        c = f_g * c + i_g * g_g
        h = o_g * jnp.tanh(c)
        return (h, c), None

    (h, c), _ = lax.scan(step, (h, c), jnp.transpose(x, (1, 0, 2)))
    return h @ w_fc + b_fc


def init_params(key, vocab_size, embed_size, hidden_size, output_size):
    ks = jax.random.split(key, 7)
    scale = 0.1
    # PyTorch gate order [i, f, g, o]; weights stored pre-transposed
    # (right-multiply form), bias = b_ih + b_hh.
    return {
        "embedding": scale * jax.random.normal(ks[0], (vocab_size, embed_size), jnp.float32),
        "w_ih": scale * jax.random.normal(ks[1], (embed_size, 4 * hidden_size), jnp.float32),
        "w_hh": scale * jax.random.normal(ks[2], (hidden_size, 4 * hidden_size), jnp.float32),
        "b": (scale * jax.random.normal(ks[3], (1, 4 * hidden_size), jnp.float32)
              + scale * jax.random.normal(ks[4], (1, 4 * hidden_size), jnp.float32)),
        "w_fc": scale * jax.random.normal(ks[5], (hidden_size, output_size), jnp.float32),
        "b_fc": scale * jax.random.normal(ks[6], (1, output_size), jnp.float32),
    }


if __name__ == "__main__":
    vocab_size, embed_size, hidden_size, output_size = 64, 32, 32, 16
    batch, seq_len = 8, 8

    key = jax.random.PRNGKey(0)
    k_param, k_ids = jax.random.split(key)
    params = init_params(k_param, vocab_size, embed_size, hidden_size, output_size)
    input_ids = jax.random.randint(k_ids, (batch, seq_len), 0, vocab_size, jnp.int32)

    ref = jax.block_until_ready(rnn_model_reference(input_ids, params))

    # Exact-semantics check: f32 matmuls, single time chunk.
    out_f32 = jax.block_until_ready(
        rnn_model_forward(input_ids, params, matmul_dtype=jnp.float32))
    assert out_f32.shape == (batch, output_size)
    assert jnp.allclose(out_f32, ref, atol=1e-4, rtol=1e-4), "f32 mismatch vs reference"

    # Default fast path: bf16 MXU operands + chunked time axis (exercises the
    # h/c VMEM carry across grid steps).
    out_fast = jax.block_until_ready(
        rnn_model_forward(input_ids, params, time_chunk=4))
    assert out_fast.shape == (batch, output_size)
    assert jnp.allclose(out_fast, ref, atol=3e-2, rtol=3e-2), "bf16 mismatch vs reference"

    print("KERNEL_OK")
</pallas_src>

<mosaic_0001>
module attributes {stable_mosaic.version = 11 : i64} {
  func.func @_lstm_fc_kernel(%arg0: i32, %arg1: memref<64x512xf32, #tpu.memory_space<vmem>>, %arg2: memref<128x512xf32, #tpu.memory_space<vmem>>, %arg3: memref<128x128xf32, #tpu.memory_space<vmem>>, %arg4: memref<1x128xf32, #tpu.memory_space<vmem>>, %arg5: memref<8x128xf32, #tpu.memory_space<vmem>>, %arg6: memref<8x128xf32, #tpu.memory_space<vmem>>, %arg7: memref<8x128xf32, #tpu.memory_space<vmem>>) attributes {dimension_semantics = [#tpu.dimension_semantics<arbitrary>], iteration_bounds = array<i64: 1>, scalar_prefetch = 0 : i64, scratch_operands = 2 : i64, tpu.core_type = #tpu.core_type<tc>, window_params = [{transform_indices = @transform_0, window_bounds = array<i64: 64, 512>}, {pipeline_mode = #tpu.pipeline_mode<synchronous>, transform_indices = @transform_1, window_bounds = array<i64: 128, 512>}, {pipeline_mode = #tpu.pipeline_mode<synchronous>, transform_indices = @transform_2, window_bounds = array<i64: 128, 128>}, {pipeline_mode = #tpu.pipeline_mode<synchronous>, transform_indices = @transform_3, window_bounds = array<i64: 1, 128>}, {pipeline_mode = #tpu.pipeline_mode<synchronous>, transform_indices = @transform_4, window_bounds = array<i64: 8, 128>}]} {
    %c0_i32 = arith.constant 0 : i32
    %0 = arith.cmpi eq, %arg0, %c0_i32 : i32
    %1 = arith.extui %0 : i1 to i32
    %c0_i32_0 = arith.constant 0 : i32
    %2 = arith.cmpi ne, %1, %c0_i32_0 : i32
    scf.if %2 {
      %cst_40 = arith.constant 0.000000e+00 : f32
      %175 = vector.broadcast %cst_40 : f32 to vector<8x128xf32>
      %c0_41 = arith.constant 0 : index
      %c0_42 = arith.constant 0 : index
      %176 = vector.load %arg6[%c0_41, %c0_42] : memref<8x128xf32, #tpu.memory_space<vmem>>, vector<8x128xf32>
      tpu.vector_store %arg6[%c0_41, %c0_42], %175 {strides = array<i32>} : memref<8x128xf32, #tpu.memory_space<vmem>>, vector<8x128xf32>,
      %cst_43 = arith.constant 0.000000e+00 : f32
      %177 = vector.broadcast %cst_43 : f32 to vector<8x128xf32>
      %c0_44 = arith.constant 0 : index
      %c0_45 = arith.constant 0 : index
      %178 = vector.load %arg7[%c0_44, %c0_45] : memref<8x128xf32, #tpu.memory_space<vmem>>, vector<8x128xf32>
      tpu.vector_store %arg7[%c0_44, %c0_45], %177 {strides = array<i32>} : memref<8x128xf32, #tpu.memory_space<vmem>>, vector<8x128xf32>,
    } else {
    }
    %c0 = arith.constant 0 : index
    %c0_1 = arith.constant 0 : index
    %3 = vector.load %arg2[%c0, %c0_1] : memref<128x512xf32, #tpu.memory_space<vmem>>, vector<128x512xf32>
    %4 = tpu.iota {dimensions = array<i32: 1>} : vector<8x512xi32>
    %c256_i32 = arith.constant 256 : i32
    %5 = vector.broadcast %c256_i32 : i32 to vector<8x512xi32>
    %6 = arith.cmpi sge, %4, %5 : vector<8x512xi32>
    %c384_i32 = arith.constant 384 : i32
    %7 = vector.broadcast %c384_i32 : i32 to vector<8x512xi32>
    %8 = arith.cmpi slt, %4, %7 : vector<8x512xi32>
    %9 = arith.andi %6, %8 : vector<8x512xi1>
    %cst = arith.constant 1.000000e+00 : f32
    %cst_2 = arith.constant 5.000000e-01 : f32
    %10 = vector.broadcast %cst : f32 to vector<8x512xf32>
    %11 = vector.broadcast %cst_2 : f32 to vector<8x512xf32>
    %12 = arith.select %9, %10, %11 : vector<8x512xi1>, vector<8x512xf32>
    %cst_3 = arith.constant 0.000000e+00 : f32
    %cst_4 = arith.constant 5.000000e-01 : f32
    %13 = vector.broadcast %cst_3 : f32 to vector<8x512xf32>
    %14 = vector.broadcast %cst_4 : f32 to vector<8x512xf32>
    %15 = arith.select %9, %13, %14 : vector<8x512xi1>, vector<8x512xf32>
    %c0_5 = arith.constant 0 : index
    %c0_6 = arith.constant 0 : index
    %16 = vector.load %arg6[%c0_5, %c0_6] : memref<8x128xf32, #tpu.memory_space<vmem>>, vector<8x128xf32>
    %c0_7 = arith.constant 0 : index
    %c0_8 = arith.constant 0 : index
    %17 = vector.load %arg7[%c0_7, %c0_8] : memref<8x128xf32, #tpu.memory_space<vmem>>, vector<8x128xf32>
    %c0_i32_9 = arith.constant 0 : i32
    %c8_i32 = arith.constant 8 : i32
    %18 = arith.muli %c0_i32_9, %c8_i32 : i32
    %19 = tpu.assume_multiple %18, 8 : i32
    %20 = arith.index_cast %19 : i32 to index
    %c0_10 = arith.constant 0 : index
    %21 = vector.load %arg1[%20, %c0_10] : memref<64x512xf32, #tpu.memory_space<vmem>>, vector<8x512xf32>
    %cst_11 = arith.constant dense<0.000000e+00> : vector<8x512xf32>
    %22 = tpu.matmul %16, %3, %cst_11 {dimension_numbers = #tpu.dot_dimension_numbers<[1], [0], [0], [1], [0, 0, 1, 1], [], []>} : vector<8x128xf32>, vector<128x512xf32>, vector<8x512xf32> -> vector<8x512xf32>
    %23 = arith.addf %21, %22 : vector<8x512xf32>
    %24 = arith.mulf %23, %12 : vector<8x512xf32>
    %25 = math.tanh %24 : vector<8x512xf32>
    %26 = arith.mulf %25, %12 : vector<8x512xf32>
    %27 = arith.addf %26, %15 : vector<8x512xf32>
    %28 = vector.extract_strided_slice %27 {offsets = [0, 0], sizes = [8, 128], strides = [1, 1]} : vector<8x512xf32> to vector<8x128xf32>
    %29 = vector.extract_strided_slice %27 {offsets = [0, 128], sizes = [8, 128], strides = [1, 1]} : vector<8x512xf32> to vector<8x128xf32>
    %30 = vector.extract_strided_slice %27 {offsets = [0, 256], sizes = [8, 128], strides = [1, 1]} : vector<8x512xf32> to vector<8x128xf32>
    %31 = vector.extract_strided_slice %27 {offsets = [0, 384], sizes = [8, 128], strides = [1, 1]} : vector<8x512xf32> to vector<8x128xf32>
    %32 = arith.mulf %29, %17 : vector<8x128xf32>
    %33 = arith.mulf %28, %30 : vector<8x128xf32>
    %34 = arith.addf %32, %33 : vector<8x128xf32>
    %35 = math.tanh %34 : vector<8x128xf32>
    %36 = arith.mulf %31, %35 : vector<8x128xf32>
    %c1_i32 = arith.constant 1 : i32
    %c8_i32_12 = arith.constant 8 : i32
    %37 = arith.muli %c1_i32, %c8_i32_12 : i32
    %38 = tpu.assume_multiple %37, 8 : i32
    %39 = arith.index_cast %38 : i32 to index
    %c0_13 = arith.constant 0 : index
    %40 = vector.load %arg1[%39, %c0_13] : memref<64x512xf32, #tpu.memory_space<vmem>>, vector<8x512xf32>
    %cst_14 = arith.constant dense<0.000000e+00> : vector<8x512xf32>
    %41 = tpu.matmul %36, %3, %cst_14 {dimension_numbers = #tpu.dot_dimension_numbers<[1], [0], [0], [1], [0, 0, 1, 1], [], []>} : vector<8x128xf32>, vector<128x512xf32>, vector<8x512xf32> -> vector<8x512xf32>
    %42 = arith.addf %40, %41 : vector<8x512xf32>
    %43 = arith.mulf %42, %12 : vector<8x512xf32>
    %44 = math.tanh %43 : vector<8x512xf32>
    %45 = arith.mulf %44, %12 : vector<8x512xf32>
    %46 = arith.addf %45, %15 : vector<8x512xf32>
    %47 = vector.extract_strided_slice %46 {offsets = [0, 0], sizes = [8, 128], strides = [1, 1]} : vector<8x512xf32> to vector<8x128xf32>
    %48 = vector.extract_strided_slice %46 {offsets = [0, 128], sizes = [8, 128], strides = [1, 1]} : vector<8x512xf32> to vector<8x128xf32>
    %49 = vector.extract_strided_slice %46 {offsets = [0, 256], sizes = [8, 128], strides = [1, 1]} : vector<8x512xf32> to vector<8x128xf32>
    %50 = vector.extract_strided_slice %46 {offsets = [0, 384], sizes = [8, 128], strides = [1, 1]} : vector<8x512xf32> to vector<8x128xf32>
    %51 = arith.mulf %48, %34 : vector<8x128xf32>
    %52 = arith.mulf %47, %49 : vector<8x128xf32>
    %53 = arith.addf %51, %52 : vector<8x128xf32>
    %54 = math.tanh %53 : vector<8x128xf32>
    %55 = arith.mulf %50, %54 : vector<8x128xf32>
    %c2_i32 = arith.constant 2 : i32
    %c8_i32_15 = arith.constant 8 : i32
    %56 = arith.muli %c2_i32, %c8_i32_15 : i32
    %57 = tpu.assume_multiple %56, 8 : i32
    %58 = arith.index_cast %57 : i32 to index
    %c0_16 = arith.constant 0 : index
    %59 = vector.load %arg1[%58, %c0_16] : memref<64x512xf32, #tpu.memory_space<vmem>>, vector<8x512xf32>
    %cst_17 = arith.constant dense<0.000000e+00> : vector<8x512xf32>
    %60 = tpu.matmul %55, %3, %cst_17 {dimension_numbers = #tpu.dot_dimension_numbers<[1], [0], [0], [1], [0, 0, 1, 1], [], []>} : vector<8x128xf32>, vector<128x512xf32>, vector<8x512xf32> -> vector<8x512xf32>
    %61 = arith.addf %59, %60 : vector<8x512xf32>
    %62 = arith.mulf %61, %12 : vector<8x512xf32>
    %63 = math.tanh %62 : vector<8x512xf32>
    %64 = arith.mulf %63, %12 : vector<8x512xf32>
    %65 = arith.addf %64, %15 : vector<8x512xf32>
    %66 = vector.extract_strided_slice %65 {offsets = [0, 0], sizes = [8, 128], strides = [1, 1]} : vector<8x512xf32> to vector<8x128xf32>
    %67 = vector.extract_strided_slice %65 {offsets = [0, 128], sizes = [8, 128], strides = [1, 1]} : vector<8x512xf32> to vector<8x128xf32>
    %68 = vector.extract_strided_slice %65 {offsets = [0, 256], sizes = [8, 128], strides = [1, 1]} : vector<8x512xf32> to vector<8x128xf32>
    %69 = vector.extract_strided_slice %65 {offsets = [0, 384], sizes = [8, 128], strides = [1, 1]} : vector<8x512xf32> to vector<8x128xf32>
    %70 = arith.mulf %67, %53 : vector<8x128xf32>
    %71 = arith.mulf %66, %68 : vector<8x128xf32>
    %72 = arith.addf %70, %71 : vector<8x128xf32>
    %73 = math.tanh %72 : vector<8x128xf32>
    %74 = arith.mulf %69, %73 : vector<8x128xf32>
    %c3_i32 = arith.constant 3 : i32
    %c8_i32_18 = arith.constant 8 : i32
    %75 = arith.muli %c3_i32, %c8_i32_18 : i32
    %76 = tpu.assume_multiple %75, 8 : i32
    %77 = arith.index_cast %76 : i32 to index
    %c0_19 = arith.constant 0 : index
    %78 = vector.load %arg1[%77, %c0_19] : memref<64x512xf32, #tpu.memory_space<vmem>>, vector<8x512xf32>
    %cst_20 = arith.constant dense<0.000000e+00> : vector<8x512xf32>
    %79 = tpu.matmul %74, %3, %cst_20 {dimension_numbers = #tpu.dot_dimension_numbers<[1], [0], [0], [1], [0, 0, 1, 1], [], []>} : vector<8x128xf32>, vector<128x512xf32>, vector<8x512xf32> -> vector<8x512xf32>
    %80 = arith.addf %78, %79 : vector<8x512xf32>
    %81 = arith.mulf %80, %12 : vector<8x512xf32>
    %82 = math.tanh %81 : vector<8x512xf32>
    %83 = arith.mulf %82, %12 : vector<8x512xf32>
    %84 = arith.addf %83, %15 : vector<8x512xf32>
    %85 = vector.extract_strided_slice %84 {offsets = [0, 0], sizes = [8, 128], strides = [1, 1]} : vector<8x512xf32> to vector<8x128xf32>
    %86 = vector.extract_strided_slice %84 {offsets = [0, 128], sizes = [8, 128], strides = [1, 1]} : vector<8x512xf32> to vector<8x128xf32>
    %87 = vector.extract_strided_slice %84 {offsets = [0, 256], sizes = [8, 128], strides = [1, 1]} : vector<8x512xf32> to vector<8x128xf32>
    %88 = vector.extract_strided_slice %84 {offsets = [0, 384], sizes = [8, 128], strides = [1, 1]} : vector<8x512xf32> to vector<8x128xf32>
    %89 = arith.mulf %86, %72 : vector<8x128xf32>
    %90 = arith.mulf %85, %87 : vector<8x128xf32>
    %91 = arith.addf %89, %90 : vector<8x128xf32>
    %92 = math.tanh %91 : vector<8x128xf32>
    %93 = arith.mulf %88, %92 : vector<8x128xf32>
    %c4_i32 = arith.constant 4 : i32
    %c8_i32_21 = arith.constant 8 : i32
    %94 = arith.muli %c4_i32, %c8_i32_21 : i32
    %95 = tpu.assume_multiple %94, 8 : i32
    %96 = arith.index_cast %95 : i32 to index
    %c0_22 = arith.constant 0 : index
    %97 = vector.load %arg1[%96, %c0_22] : memref<64x512xf32, #tpu.memory_space<vmem>>, vector<8x512xf32>
    %cst_23 = arith.constant dense<0.000000e+00> : vector<8x512xf32>
    %98 = tpu.matmul %93, %3, %cst_23 {dimension_numbers = #tpu.dot_dimension_numbers<[1], [0], [0], [1], [0, 0, 1, 1], [], []>} : vector<8x128xf32>, vector<128x512xf32>, vector<8x512xf32> -> vector<8x512xf32>
    %99 = arith.addf %97, %98 : vector<8x512xf32>
    %100 = arith.mulf %99, %12 : vector<8x512xf32>
    %101 = math.tanh %100 : vector<8x512xf32>
    %102 = arith.mulf %101, %12 : vector<8x512xf32>
    %103 = arith.addf %102, %15 : vector<8x512xf32>
    %104 = vector.extract_strided_slice %103 {offsets = [0, 0], sizes = [8, 128], strides = [1, 1]} : vector<8x512xf32> to vector<8x128xf32>
    %105 = vector.extract_strided_slice %103 {offsets = [0, 128], sizes = [8, 128], strides = [1, 1]} : vector<8x512xf32> to vector<8x128xf32>
    %106 = vector.extract_strided_slice %103 {offsets = [0, 256], sizes = [8, 128], strides = [1, 1]} : vector<8x512xf32> to vector<8x128xf32>
    %107 = vector.extract_strided_slice %103 {offsets = [0, 384], sizes = [8, 128], strides = [1, 1]} : vector<8x512xf32> to vector<8x128xf32>
    %108 = arith.mulf %105, %91 : vector<8x128xf32>
    %109 = arith.mulf %104, %106 : vector<8x128xf32>
    %110 = arith.addf %108, %109 : vector<8x128xf32>
    %111 = math.tanh %110 : vector<8x128xf32>
    %112 = arith.mulf %107, %111 : vector<8x128xf32>
    %c5_i32 = arith.constant 5 : i32
    %c8_i32_24 = arith.constant 8 : i32
    %113 = arith.muli %c5_i32, %c8_i32_24 : i32
    %114 = tpu.assume_multiple %113, 8 : i32
    %115 = arith.index_cast %114 : i32 to index
    %c0_25 = arith.constant 0 : index
    %116 = vector.load %arg1[%115, %c0_25] : memref<64x512xf32, #tpu.memory_space<vmem>>, vector<8x512xf32>
    %cst_26 = arith.constant dense<0.000000e+00> : vector<8x512xf32>
    %117 = tpu.matmul %112, %3, %cst_26 {dimension_numbers = #tpu.dot_dimension_numbers<[1], [0], [0], [1], [0, 0, 1, 1], [], []>} : vector<8x128xf32>, vector<128x512xf32>, vector<8x512xf32> -> vector<8x512xf32>
    %118 = arith.addf %116, %117 : vector<8x512xf32>
    %119 = arith.mulf %118, %12 : vector<8x512xf32>
    %120 = math.tanh %119 : vector<8x512xf32>
    %121 = arith.mulf %120, %12 : vector<8x512xf32>
    %122 = arith.addf %121, %15 : vector<8x512xf32>
    %123 = vector.extract_strided_slice %122 {offsets = [0, 0], sizes = [8, 128], strides = [1, 1]} : vector<8x512xf32> to vector<8x128xf32>
    %124 = vector.extract_strided_slice %122 {offsets = [0, 128], sizes = [8, 128], strides = [1, 1]} : vector<8x512xf32> to vector<8x128xf32>
    %125 = vector.extract_strided_slice %122 {offsets = [0, 256], sizes = [8, 128], strides = [1, 1]} : vector<8x512xf32> to vector<8x128xf32>
    %126 = vector.extract_strided_slice %122 {offsets = [0, 384], sizes = [8, 128], strides = [1, 1]} : vector<8x512xf32> to vector<8x128xf32>
    %127 = arith.mulf %124, %110 : vector<8x128xf32>
    %128 = arith.mulf %123, %125 : vector<8x128xf32>
    %129 = arith.addf %127, %128 : vector<8x128xf32>
    %130 = math.tanh %129 : vector<8x128xf32>
    %131 = arith.mulf %126, %130 : vector<8x128xf32>
    %c6_i32 = arith.constant 6 : i32
    %c8_i32_27 = arith.constant 8 : i32
    %132 = arith.muli %c6_i32, %c8_i32_27 : i32
    %133 = tpu.assume_multiple %132, 8 : i32
    %134 = arith.index_cast %133 : i32 to index
    %c0_28 = arith.constant 0 : index
    %135 = vector.load %arg1[%134, %c0_28] : memref<64x512xf32, #tpu.memory_space<vmem>>, vector<8x512xf32>
    %cst_29 = arith.constant dense<0.000000e+00> : vector<8x512xf32>
    %136 = tpu.matmul %131, %3, %cst_29 {dimension_numbers = #tpu.dot_dimension_numbers<[1], [0], [0], [1], [0, 0, 1, 1], [], []>} : vector<8x128xf32>, vector<128x512xf32>, vector<8x512xf32> -> vector<8x512xf32>
    %137 = arith.addf %135, %136 : vector<8x512xf32>
    %138 = arith.mulf %137, %12 : vector<8x512xf32>
    %139 = math.tanh %138 : vector<8x512xf32>
    %140 = arith.mulf %139, %12 : vector<8x512xf32>
    %141 = arith.addf %140, %15 : vector<8x512xf32>
    %142 = vector.extract_strided_slice %141 {offsets = [0, 0], sizes = [8, 128], strides = [1, 1]} : vector<8x512xf32> to vector<8x128xf32>
    %143 = vector.extract_strided_slice %141 {offsets = [0, 128], sizes = [8, 128], strides = [1, 1]} : vector<8x512xf32> to vector<8x128xf32>
    %144 = vector.extract_strided_slice %141 {offsets = [0, 256], sizes = [8, 128], strides = [1, 1]} : vector<8x512xf32> to vector<8x128xf32>
    %145 = vector.extract_strided_slice %141 {offsets = [0, 384], sizes = [8, 128], strides = [1, 1]} : vector<8x512xf32> to vector<8x128xf32>
    %146 = arith.mulf %143, %129 : vector<8x128xf32>
    %147 = arith.mulf %142, %144 : vector<8x128xf32>
    %148 = arith.addf %146, %147 : vector<8x128xf32>
    %149 = math.tanh %148 : vector<8x128xf32>
    %150 = arith.mulf %145, %149 : vector<8x128xf32>
    %c7_i32 = arith.constant 7 : i32
    %c8_i32_30 = arith.constant 8 : i32
    %151 = arith.muli %c7_i32, %c8_i32_30 : i32
    %152 = tpu.assume_multiple %151, 8 : i32
    %153 = arith.index_cast %152 : i32 to index
    %c0_31 = arith.constant 0 : index
    %154 = vector.load %arg1[%153, %c0_31] : memref<64x512xf32, #tpu.memory_space<vmem>>, vector<8x512xf32>
    %cst_32 = arith.constant dense<0.000000e+00> : vector<8x512xf32>
    %155 = tpu.matmul %150, %3, %cst_32 {dimension_numbers = #tpu.dot_dimension_numbers<[1], [0], [0], [1], [0, 0, 1, 1], [], []>} : vector<8x128xf32>, vector<128x512xf32>, vector<8x512xf32> -> vector<8x512xf32>
    %156 = arith.addf %154, %155 : vector<8x512xf32>
    %157 = arith.mulf %156, %12 : vector<8x512xf32>
    %158 = math.tanh %157 : vector<8x512xf32>
    %159 = arith.mulf %158, %12 : vector<8x512xf32>
    %160 = arith.addf %159, %15 : vector<8x512xf32>
    %161 = vector.extract_strided_slice %160 {offsets = [0, 0], sizes = [8, 128], strides = [1, 1]} : vector<8x512xf32> to vector<8x128xf32>
    %162 = vector.extract_strided_slice %160 {offsets = [0, 128], sizes = [8, 128], strides = [1, 1]} : vector<8x512xf32> to vector<8x128xf32>
    %163 = vector.extract_strided_slice %160 {offsets = [0, 256], sizes = [8, 128], strides = [1, 1]} : vector<8x512xf32> to vector<8x128xf32>
    %164 = vector.extract_strided_slice %160 {offsets = [0, 384], sizes = [8, 128], strides = [1, 1]} : vector<8x512xf32> to vector<8x128xf32>
    %165 = arith.mulf %162, %148 : vector<8x128xf32>
    %166 = arith.mulf %161, %163 : vector<8x128xf32>
    %167 = arith.addf %165, %166 : vector<8x128xf32>
    %168 = math.tanh %167 : vector<8x128xf32>
    %169 = arith.mulf %164, %168 : vector<8x128xf32>
    %c8_i32_33 = arith.constant 8 : i32
    %c0_34 = arith.constant 0 : index
    %c0_35 = arith.constant 0 : index
    %170 = vector.load %arg6[%c0_34, %c0_35] : memref<8x128xf32, #tpu.memory_space<vmem>>, vector<8x128xf32>
    tpu.vector_store %arg6[%c0_34, %c0_35], %169 {strides = array<i32>} : memref<8x128xf32, #tpu.memory_space<vmem>>, vector<8x128xf32>,
    %c0_36 = arith.constant 0 : index
    %c0_37 = arith.constant 0 : index
    %171 = vector.load %arg7[%c0_36, %c0_37] : memref<8x128xf32, #tpu.memory_space<vmem>>, vector<8x128xf32>
    tpu.vector_store %arg7[%c0_36, %c0_37], %167 {strides = array<i32>} : memref<8x128xf32, #tpu.memory_space<vmem>>, vector<8x128xf32>,
    %c0_i32_38 = arith.constant 0 : i32
    %172 = arith.cmpi eq, %arg0, %c0_i32_38 : i32
    %173 = arith.extui %172 : i1 to i32
    %c0_i32_39 = arith.constant 0 : i32
    %174 = arith.cmpi ne, %173, %c0_i32_39 : i32
    scf.if %174 {
      %c0_40 = arith.constant 0 : index
      %c0_41 = arith.constant 0 : index
      %175 = vector.load %arg3[%c0_40, %c0_41] : memref<128x128xf32, #tpu.memory_space<vmem>>, vector<128x128xf32>
      %cst_42 = arith.constant dense<0.000000e+00> : vector<8x128xf32>
      %176 = tpu.matmul %169, %175, %cst_42 {dimension_numbers = #tpu.dot_dimension_numbers<[1], [0], [0], [1], [0, 0, 1, 1], [], []>} : vector<8x128xf32>, vector<128x128xf32>, vector<8x128xf32> -> vector<8x128xf32>
      %c0_43 = arith.constant 0 : index
      %c0_44 = arith.constant 0 : index
      %177 = vector.load %arg4[%c0_43, %c0_44] : memref<1x128xf32, #tpu.memory_space<vmem>>, vector<1x128xf32>
      %178 = vector.broadcast %177 : vector<1x128xf32> to vector<8x128xf32>
      %179 = arith.addf %176, %178 : vector<8x128xf32>
      %c0_45 = arith.constant 0 : index
      %c0_46 = arith.constant 0 : index
      %180 = vector.load %arg5[%c0_45, %c0_46] : memref<8x128xf32, #tpu.memory_space<vmem>>, vector<8x128xf32>
      tpu.vector_store %arg5[%c0_45, %c0_46], %179 {strides = array<i32>} : memref<8x128xf32, #tpu.memory_space<vmem>>, vector<8x128xf32>,
    } else {
    }
    return
  }
  func.func @transform_0(%arg0: i32) -> (i32, i32) {
    %c0_i32 = arith.constant 0 : i32
    %c0_i32_0 = arith.constant 0 : i32
    return %arg0, %c0_i32 : i32, i32
  }
  func.func @transform_1(%arg0: i32) -> (i32, i32) {
    %c0_i32 = arith.constant 0 : i32
    %c0_i32_0 = arith.constant 0 : i32
    %c0_i32_1 = arith.constant 0 : i32
    return %c0_i32, %c0_i32_0 : i32, i32
  }
  func.func @transform_2(%arg0: i32) -> (i32, i32) {
    %c0_i32 = arith.constant 0 : i32
    %c0_i32_0 = arith.constant 0 : i32
    %c0_i32_1 = arith.constant 0 : i32
    return %c0_i32, %c0_i32_0 : i32, i32
  }
  func.func @transform_3(%arg0: i32) -> (i32, i32) {
    %c0_i32 = arith.constant 0 : i32
    %c0_i32_0 = arith.constant 0 : i32
    %c0_i32_1 = arith.constant 0 : i32
    return %c0_i32, %c0_i32_0 : i32, i32
  }
  func.func @transform_4(%arg0: i32) -> (i32, i32) {
    %c0_i32 = arith.constant 0 : i32
    %c0_i32_0 = arith.constant 0 : i32
    %c0_i32_1 = arith.constant 0 : i32
    return %c0_i32, %c0_i32_0 : i32, i32
  }
}

</mosaic_0001>

<bundles_post_ra>
// kernel: tpu_custom_call.1
= control target key start
LH: loop header
LB: loop body
LE: loop exit
PB: predicated region body
PF: predicated region fallthrough
CT: control target
= control target key end

     0   :  { %9 = vsyncpa [#allocation5], 0  ;;  %s2905_s0 = inlined_call_operand.hbm [shape: f32[64,512], index: 0, kind: input, shape index: {}]   ;;  %s2906_s1 = inlined_call_operand.hbm [shape: f32[128,512], index: 1, kind: input, shape index: {}]   ;;  %s2907_s2 = inlined_call_operand.hbm [shape: f32[128,128], index: 2, kind: input, shape index: {}]   ;;  %s2908_s3 = inlined_call_operand.vmem [shape: f32[1,128], index: 3, kind: input, shape index: {}]   ;;  %s2909_s4 = inlined_call_operand.hbm [shape: f32[8,128], index: 4, kind: output, shape index: {}]  }
   0x1   :  { %10 = vsyncpa [#allocation8], 0 }
   0x2   :  { %11 = vsyncpa [#allocation6], 0  ;;  %s2444_s15 = smov [#allocation7]   ;;  %s2445_s17 = smov [#allocation4]  }
   0x3   :  { %s29_s16 = sshll.u32 %s2444_s15, 4  ;;  %s17_s18 = sshll.u32 %s2445_s17, 4  ;;  %s30_s16 = int_to_ptr.vmem [resolvable:$true] %s29_s16  ;;  %s2480_s18 = int_to_ptr.vmem [resolvable:$true] %s17_s18 }
   0x4   :  { %s2350_s21 = scalar_lea.hbm %s2906_s1, 8192 }
   0x5   :  { %p2351_p0 = scmp.ne.s32.totalorder %s2906_s1, %s2350_s21  ;;  %p2354_p1 = scmp.lt.u32.totalorder %s2350_s21, %s2906_s1 }
   0x7   :  { %p2356_p2 = pnand %p2354_p1, %p2351_p0 }
   0x9   :  { %2359 = shalt.err (!%p2356_p2)
}
   0xa   :  { %s2360_s26 = scalar_lea.vmem %s30_s16, 8192  ;;  %p2365_p4 = scmp.lt.s32.totalorder %s30_s16, %s30_s16 }
   0xb   :  { %p2361_p3 = scmp.ne.s32.totalorder %s30_s16, %s2360_s26  ;;  %p2366_p5 = scmp.lt.s32.totalorder %s2360_s26, %s2360_s26 }
   0xd   :  { %p2367_p6 = por %p2366_p5, %p2365_p4 }
   0xf   :  { %p2368_p7 = pnand %p2367_p6, %p2361_p3 }
  0x11   :  { %2371 = shalt.err (!%p2368_p7)
}
  0x12   :  { %s2446_s27 = smov 512   ;;  %s2447_s28 = smov 32  }
  0x13   :  { %35 = dma.hbm_to_vmem [thread:$0]  %s2906_s1, 8192, %s30_s16, [#allocation8], %s2446_s27, %s2446_s27, %s2447_s28  }
  0x14   :  { %s2372_s7 = scalar_lea.hbm %s2905_s0, 4096 }
  0x15   :  { %p2373_p8 = scmp.ne.s32.totalorder %s2905_s0, %s2372_s7  ;;  %p2376_p9 = scmp.lt.u32.totalorder %s2372_s7, %s2905_s0 }
  0x17   :  { %p2378_p10 = pnand %p2376_p9, %p2373_p8 }
  0x19   :  { %2381 = shalt.err (!%p2378_p10)
}
  0x1a   :  { %s2382_s12 = scalar_lea.vmem %s2480_s18, 4096  ;;  %p2387_p12 = scmp.lt.s32.totalorder %s2480_s18, %s2480_s18 }
  0x1b   :  { %p2383_p11 = scmp.ne.s32.totalorder %s2480_s18, %s2382_s12  ;;  %p2388_p13 = scmp.lt.s32.totalorder %s2382_s12, %s2382_s12 }
  0x1d   :  { %p2389_p0 = por %p2388_p13, %p2387_p12 }
  0x1f   :  { %p2390_p1 = pnand %p2389_p0, %p2383_p11 }
  0x21   :  { %2393 = shalt.err (!%p2390_p1)
}
  0x22   :  { %23 = dma.hbm_to_vmem [thread:$0]  %s2905_s0, 4096, %s2480_s18, [#allocation5], %s2446_s27, %s2446_s27, %s2447_s28  }
  0x23   :  { %s2448_s14 = smov [#allocation9]   ;;  %s2394_s19 = scalar_lea.hbm %s2907_s2, 2048 }
  0x24   :  { %s41_s15 = sshll.u32 %s2448_s14, 4  ;;  %p2395_p2 = scmp.ne.s32.totalorder %s2907_s2, %s2394_s19  ;;  %s42_s15 = int_to_ptr.vmem [resolvable:$true] %s41_s15 }
  0x25   :  { %p2398_p3 = scmp.lt.u32.totalorder %s2394_s19, %s2907_s2 }
  0x27   :  { %p2400_p4 = pnand %p2398_p3, %p2395_p2 }
  0x29   :  { %2403 = shalt.err (!%p2400_p4)
}
  0x2a   :  { %s2404_s24 = scalar_lea.vmem %s42_s15, 2048  ;;  %p2409_p6 = scmp.lt.s32.totalorder %s42_s15, %s42_s15 }
  0x2b   :  { %p2405_p5 = scmp.ne.s32.totalorder %s42_s15, %s2404_s24  ;;  %p2410_p7 = scmp.lt.s32.totalorder %s2404_s24, %s2404_s24 }
  0x2d   :  { %p2411_p8 = por %p2410_p7, %p2409_p6 }
  0x2f   :  { %p2412_p9 = pnand %p2411_p8, %p2405_p5 }
  0x31   :  { %2415 = shalt.err (!%p2412_p9)
}
  0x32   :  { %s2449_s0 = smov 128   ;;  %s2450_s18 = smov 8  }
  0x33   :  { %47 = dma.hbm_to_vmem [thread:$0]  %s2907_s2, 2048, %s42_s15, [#allocation8], %s2449_s0, %s2449_s0, %s2450_s18  }
  0x34   :  { %2438 = dma.done.wait [#allocation5], 4096  }
  0x35   :  { %2439 = vsyncadd [#allocation5], 4294963200 }
  0x36   :  { %2440 = dma.done.wait [#allocation8], 10240  }
  0x37   :  { %2441 = vsyncadd [#allocation8], 4294957056  ;;  %v2451_v0 = vmov 0.0   ;;  %v66_v1 = vld [vmem:[#allocation7 + $0x8] sm:$0xff]  ;;  %v65_v3 = vld [vmem:[#allocation7] sm:$0xff]  ;;  %vm2453_vm0 = vmmov 0  }
  0x38   :  { %227 = vmatprep.mubr.f32.mxu0 %v2451_v0  ;;  %298 = vmatprep.mubr.f32.mxu1 %v2451_v0  ;;  %v70_v2 = vld [vmem:[#allocation7 + $0x28] sm:$0xff]  ;;  %v69_v5 = vld [vmem:[#allocation7 + $0x20] sm:$0xff]  ;;  %v68_v12 = vld [vmem:[#allocation7 + $0x18] sm:$0xff]  ;;  %s2454_s28 = smov [#allocation10]  }
  0x39   :  { %v2525_v4 = vpack.c.bf16 %v70_v2, %v66_v1  ;;  %v74_v6 = vld [vmem:[#allocation7 + $0x48] sm:$0xff]  ;;  %v2527_v8 = vpack.c.bf16 %v69_v5, %v65_v3  ;;  %v73_v10 = vld [vmem:[#allocation7 + $0x40] sm:$0xff]  ;;  %v72_v13 = vld [vmem:[#allocation7 + $0x38] sm:$0xff]  ;;  %s1653_s29 = sshll.u32 %s2454_s28, 4  ;;  %s1654_s29 = int_to_ptr.vmem [resolvable:$true] %s1653_s29 }
  0x3a   :  { %v78_v7 = vld [vmem:[#allocation7 + $0x68] sm:$0xff]  ;;  %v77_v11 = vld [vmem:[#allocation7 + $0x60] sm:$0xff]  ;;  %v67_v14 = vld [vmem:[#allocation7 + $0x10] sm:$0xff]  ;;  %v2535_v17 = vpack.c.bf16 %v72_v13, %v68_v12  ;;  %s2416_s30 = scalar_lea.vmem %s1654_s29, 128  ;;  %p2421_p11 = scmp.lt.s32.totalorder %s1654_s29, %s1654_s29 }
  0x3b   :  { %v2529_v9 = vpack.c.bf16 %v78_v7, %v74_v6  ;;  %1724 = vmatprep.subr.bf16.mxu0 %v2525_v4  ;;  %v71_v15 = vld [vmem:[#allocation7 + $0x30] sm:$0xff]  ;;  %v2533_v16 = vpack.c.bf16 %v77_v11, %v73_v10  ;;  %v82_v19 = vld [vmem:[#allocation7 + $0x88] sm:$0xff]  ;;  %v81_v21 = vld [vmem:[#allocation7 + $0x80] sm:$0xff]  ;;  %p2417_p10 = scmp.ne.s32.totalorder %s1654_s29, %s2416_s30  ;;  %p2422_p12 = scmp.lt.s32.totalorder %s2416_s30, %s2416_s30 }
  0x3c   :  { %1726 = vmatpush1.bf16.msra.mxu0 %v2527_v8  ;;  %v2537_v18 = vpack.c.bf16 %v71_v15, %v67_v14  ;;  %v86_v20 = vld [vmem:[#allocation7 + $0xa8] sm:$0xff]  ;;  %v85_v23 = vld [vmem:[#allocation7 + $0xa0] sm:$0xff]  ;;  %v76_v24 = vld [vmem:[#allocation7 + $0x58] sm:$0xff]  ;;  %1756 = vmatprep.subr.bf16.mxu1 %v2535_v17 }
  0x3d   :  { %1728 = vmatprep.subr.bf16.mxu0 %v2529_v9  ;;  %v2540_v22 = vpack.c.bf16 %v86_v20, %v82_v19  ;;  %v80_v25 = vld [vmem:[#allocation7 + $0x78] sm:$0xff]  ;;  %v75_v27 = vld [vmem:[#allocation7 + $0x50] sm:$0xff]  ;;  %v90_v29 = vld [vmem:[#allocation7 + $0xc8] sm:$0xff]  ;;  %v2549_v32 = vpack.c.bf16 %v85_v23, %v81_v21  ;;  %p2423_p13 = por %p2422_p12, %p2421_p11 }
  0x3e   :  { %v2543_v26 = vpack.c.bf16 %v80_v25, %v76_v24  ;;  %v79_v28 = vld [vmem:[#allocation7 + $0x70] sm:$0xff]  ;;  %1758 = vmatpush1.bf16.msra.mxu1 %v2537_v18  ;;  %v94_v31 = vld [vmem:[#allocation7 + $0xe8] sm:$0xff]  ;;  %v84_v33 = vld [vmem:[#allocation7 + $0x98] sm:$0xff] }
  0x3f   :  { %v2546_v30 = vpack.c.bf16 %v79_v28, %v75_v27  ;;  %v88_v34 = vld [vmem:[#allocation7 + $0xb8] sm:$0xff]  ;;  %v83_v35 = vld [vmem:[#allocation7 + $0x90] sm:$0xff]  ;;  %v2553_v36 = vpack.c.bf16 %v94_v31, %v90_v29  ;;  %v89_v37 = vld [vmem:[#allocation7 + $0xc0] sm:$0xff]  ;;  %p2424_p0 = pnand %p2423_p13, %p2417_p10 }
  0x40   :  { %1730 = vmatpush1.bf16.msra.mxu0 %v2533_v16  ;;  %1760 = vmatprep.subr.bf16.mxu1 %v2543_v26  ;;  %v93_v38 = vld [vmem:[#allocation7 + $0xe0] sm:$0xff]  ;;  %v2555_v39 = vpack.c.bf16 %v88_v34, %v84_v33  ;;  %v87_v40 = vld [vmem:[#allocation7 + $0xb0] sm:$0xff]  ;;  %v98_v41 = vld [vmem:[#allocation7 + $0x108] sm:$0xff] }
  0x41   :  { %1732 = vmatprep.subr.bf16.mxu0 %v2540_v22  ;;  %v102_v42 = vld [vmem:[#allocation7 + $0x128] sm:$0xff]  ;;  %v92_v43 = vld [vmem:[#allocation7 + $0xd8] sm:$0xff]  ;;  %v2558_v44 = vpack.c.bf16 %v87_v40, %v83_v35  ;;  %v2561_v46 = vpack.c.bf16 %v93_v38, %v89_v37  ;;  %v97_v47 = vld [vmem:[#allocation7 + $0x100] sm:$0xff] }
  0x42   :  { %1762 = vmatpush1.bf16.msra.mxu1 %v2546_v30  ;;  %v96_v45 = vld [vmem:[#allocation7 + $0xf8] sm:$0xff]  ;;  %v91_v49 = vld [vmem:[#allocation7 + $0xd0] sm:$0xff]  ;;  %v2567_v51 = vpack.c.bf16 %v102_v42, %v98_v41  ;;  %v101_v52 = vld [vmem:[#allocation7 + $0x120] sm:$0xff] }
  0x43   :  { %1764 = vmatprep.subr.bf16.mxu1 %v2555_v39  ;;  %v2564_v48 = vpack.c.bf16 %v96_v45, %v92_v43  ;;  %v95_v50 = vld [vmem:[#allocation7 + $0xf0] sm:$0xff]  ;;  %v100_v53 = vld [vmem:[#allocation7 + $0x118] sm:$0xff]  ;;  %v106_v55 = vld [vmem:[#allocation7 + $0x148] sm:$0xff]  ;;  %v2573_v58 = vpack.c.bf16 %v101_v52, %v97_v47 }
  0x44   :  { %1734 = vmatpush1.bf16.msra.mxu0 %v2549_v32  ;;  %v104_v54 = vld [vmem:[#allocation7 + $0x138] sm:$0xff]  ;;  %v110_v56 = vld [vmem:[#allocation7 + $0x168] sm:$0xff]  ;;  %v2570_v57 = vpack.c.bf16 %v95_v50, %v91_v49  ;;  %v105_v59 = vld [vmem:[#allocation7 + $0x140] sm:$0xff] }
  0x45   :  { %1736 = vmatprep.subr.bf16.mxu0 %v2553_v36  ;;  %v2576_v60 = vpack.c.bf16 %v104_v54, %v100_v53  ;;  %v99_v61 = vld [vmem:[#allocation7 + $0x110] sm:$0xff]  ;;  %v2579_v63 = vpack.c.bf16 %v110_v56, %v106_v55  ;;  %v109_v1 = vld [vmem:[#allocation7 + $0x160] sm:$0xff]  ;;  %v108_v2 = vld [vmem:[#allocation7 + $0x158] sm:$0xff] }
  0x46   :  { %1766 = vmatpush1.bf16.msra.mxu1 %v2558_v44  ;;  %v103_v62 = vld [vmem:[#allocation7 + $0x130] sm:$0xff]  ;;  %v112_v3 = vld [vmem:[#allocation7 + $0x178] sm:$0xff]  ;;  %v114_v5 = vld [vmem:[#allocation7 + $0x188] sm:$0xff]  ;;  %v2585_v10 = vpack.c.bf16 %v109_v1, %v105_v59 }
  0x47   :  { %1768 = vmatprep.subr.bf16.mxu1 %v2564_v48  ;;  %v118_v6 = vld [vmem:[#allocation7 + $0x1a8] sm:$0xff]  ;;  %v2582_v7 = vpack.c.bf16 %v103_v62, %v99_v61  ;;  %v113_v11 = vld [vmem:[#allocation7 + $0x180] sm:$0xff]  ;;  %v2588_v12 = vpack.c.bf16 %v112_v3, %v108_v2  ;;  %v107_v13 = vld [vmem:[#allocation7 + $0x150] sm:$0xff] }
  0x48   :  { %1738 = vmatpush1.bf16.msra.mxu0 %v2561_v46  ;;  %v111_v14 = vld [vmem:[#allocation7 + $0x170] sm:$0xff]  ;;  %v2591_v15 = vpack.c.bf16 %v118_v6, %v114_v5  ;;  %v117_v19 = vld [vmem:[#allocation7 + $0x1a0] sm:$0xff]  ;;  %v116_v20 = vld [vmem:[#allocation7 + $0x198] sm:$0xff] }
  0x49   :  { %1740 = vmatprep.subr.bf16.mxu0 %v2567_v51  ;;  %v120_v21 = vld [vmem:[#allocation7 + $0x1b8] sm:$0xff]  ;;  %v122_v23 = vld [vmem:[#allocation7 + $0x1c8] sm:$0xff]  ;;  %v2594_v25 = vpack.c.bf16 %v111_v14, %v107_v13  ;;  %v2597_v27 = vpack.c.bf16 %v117_v19, %v113_v11  ;;  %v121_v28 = vld [vmem:[#allocation7 + $0x1c0] sm:$0xff] }
  0x4a   :  { %1770 = vmatpush1.bf16.msra.mxu1 %v2570_v57  ;;  %v126_v24 = vld [vmem:[#allocation7 + $0x1e8] sm:$0xff]  ;;  %v2600_v29 = vpack.c.bf16 %v120_v21, %v116_v20  ;;  %v115_v31 = vld [vmem:[#allocation7 + $0x190] sm:$0xff]  ;;  %v125_v35 = vld [vmem:[#allocation7 + $0x1e0] sm:$0xff] }
  0x4b   :  { %1772 = vmatprep.subr.bf16.mxu1 %v2576_v60  ;;  %v119_v33 = vld [vmem:[#allocation7 + $0x1b0] sm:$0xff]  ;;  %v2603_v34 = vpack.c.bf16 %v126_v24, %v122_v23  ;;  %v124_v37 = vld [vmem:[#allocation7 + $0x1d8] sm:$0xff]  ;;  %v2609_v41 = vpack.c.bf16 %v125_v35, %v121_v28  ;;  %v159_v49 = vld [vmem:[#allocation4] sm:$0xff] }
  0x4c   :  { %1742 = vmatpush1.bf16.msra.mxu0 %v2573_v58  ;;  %v128_v38 = vld [vmem:[#allocation7 + $0x1f8] sm:$0xff]  ;;  %v2606_v40 = vpack.c.bf16 %v119_v33, %v115_v31  ;;  %v123_v43 = vld [vmem:[#allocation7 + $0x1d0] sm:$0xff]  ;;  %v160_v50 = vld [vmem:[#allocation4 + $0x8] sm:$0xff] }
  0x4d   :  { %1744 = vmatprep.subr.bf16.mxu0 %v2579_v63  ;;  %v2612_v42 = vpack.c.bf16 %v128_v38, %v124_v37  ;;  %v127_v45 = vld [vmem:[#allocation7 + $0x1f0] sm:$0xff]  ;;  %v162_v3 = vld [vmem:[#allocation4 + $0x18] sm:$0xff] }
  0x4e   :  { %1774 = vmatpush1.bf16.msra.mxu1 %v2582_v7  ;;  %v2616_v47 = vpack.c.bf16 %v127_v45, %v123_v43  ;;  %v161_v55 = vld [vmem:[#allocation4 + $0x10] sm:$0xff]  ;;  %v333_v45 = vld [vmem:[#allocation4 + $0x20] sm:$0xff] }
  0x4f   :  { %1776 = vmatprep.subr.bf16.mxu1 %v2588_v12 }
  0x50   :  { %1746 = vmatpush1.bf16.msra.mxu0 %v2585_v10 }
  0x51   :  { %1748 = vmatprep.subr.bf16.mxu0 %v2591_v15 }
  0x52   :  { %1778 = vmatpush1.bf16.msra.mxu1 %v2594_v25 }
  0x53   :  { %1780 = vmatprep.subr.bf16.mxu1 %v2600_v29 }
  0x54   :  { %1750 = vmatpush1.bf16.msra.mxu0 %v2597_v27 }
  0x55   :  { %1752 = vmatprep.subr.bf16.mxu0 %v2603_v34 }
  0x56   :  { %1782 = vmatpush1.bf16.msra.mxu1 %v2606_v40 }
  0x57   :  { %1784 = vmatprep.subr.bf16.mxu1 %v2612_v42 }
  0x58   :  { %1754 = vmatpush1.bf16.msra.mxu0 %v2609_v41 }
  0x59   :  { %1788 = vmatprep.subr.bf16.mxu0 %v2525_v4 }
  0x5a   :  { %1786 = vmatpush1.bf16.msra.mxu1 %v2616_v47 }
  0x5b   :  { %228 = vmatmul.mubr.f32.vlgmr.msra.gmra.mrb[0].mxu0 %v2451_v0  ;;  %1820 = vmatprep.subr.bf16.mxu1 %v2535_v17 }
  0x5c   :  { %1790 = vmatpush1.bf16.msra.mxu0 %v2527_v8  ;;  %401 = vmatprep.mubr.f32.mxu0 %v2451_v0 }
  0x5d   :  { %1792 = vmatprep.subr.bf16.mxu0 %v2529_v9  ;;  %299 = vmatmul.mubr.f32.vlgmr.msra.gmra.mrb[0].mxu1 %v2451_v0 }
  0x5e   :  { %1822 = vmatpush1.bf16.msra.mxu1 %v2537_v18  ;;  %472 = vmatprep.mubr.f32.mxu1 %v2451_v0 }
  0x5f   :  { %1824 = vmatprep.subr.bf16.mxu1 %v2543_v26 }
  0x60   :  { %1794 = vmatpush1.bf16.msra.mxu0 %v2533_v16 }
  0x61   :  { %1796 = vmatprep.subr.bf16.mxu0 %v2540_v22 }
  0x62   :  { %1826 = vmatpush1.bf16.msra.mxu1 %v2546_v30 }
  0x63   :  { %1828 = vmatprep.subr.bf16.mxu1 %v2555_v39 }
  0x64   :  { %1798 = vmatpush1.bf16.msra.mxu0 %v2549_v32 }
  0x65   :  { %1800 = vmatprep.subr.bf16.mxu0 %v2553_v36 }
  0x66   :  { %1830 = vmatpush1.bf16.msra.mxu1 %v2558_v44 }
  0x67   :  { %1832 = vmatprep.subr.bf16.mxu1 %v2564_v48 }
  0x68   :  { %1802 = vmatpush1.bf16.msra.mxu0 %v2561_v46 }
  0x69   :  { %1804 = vmatprep.subr.bf16.mxu0 %v2567_v51 }
  0x6a   :  { %1834 = vmatpush1.bf16.msra.mxu1 %v2570_v57 }
  0x6b   :  { %1836 = vmatprep.subr.bf16.mxu1 %v2576_v60 }
  0x6c   :  { %1806 = vmatpush1.bf16.msra.mxu0 %v2573_v58 }
  0x6d   :  { %1808 = vmatprep.subr.bf16.mxu0 %v2579_v63 }
  0x6e   :  { %1838 = vmatpush1.bf16.msra.mxu1 %v2582_v7 }
  0x6f   :  { %1840 = vmatprep.subr.bf16.mxu1 %v2588_v12 }
  0x70   :  { %1810 = vmatpush1.bf16.msra.mxu0 %v2585_v10 }
  0x71   :  { %1812 = vmatprep.subr.bf16.mxu0 %v2591_v15 }
  0x72   :  { %1842 = vmatpush1.bf16.msra.mxu1 %v2594_v25 }
  0x73   :  { %1844 = vmatprep.subr.bf16.mxu1 %v2600_v29 }
  0x74   :  { %1814 = vmatpush1.bf16.msra.mxu0 %v2597_v27 }
  0x75   :  { %1816 = vmatprep.subr.bf16.mxu0 %v2603_v34 }
  0x76   :  { %1846 = vmatpush1.bf16.msra.mxu1 %v2606_v40 }
  0x77   :  { %1848 = vmatprep.subr.bf16.mxu1 %v2612_v42 }
  0x78   :  { %1818 = vmatpush1.bf16.msra.mxu0 %v2609_v41 }
  0x79   :  { %1852 = vmatprep.subr.bf16.mxu0 %v2525_v4 }
  0x7a   :  { %1850 = vmatpush1.bf16.msra.mxu1 %v2616_v47 }
  0x7b   :  { %1884 = vmatprep.subr.bf16.mxu1 %v2535_v17 }
 0x12e   :  { %v229_v52 = vpop.f32.mrb[0].mxu0 }
 0x12f   :  { %v305_v53 = vadd.f32 %v229_v52, %v159_v49  ;;  %v231_v54 = vpop.f32.mrb[1].mxu0  ;;  %v334_v49 = vld [vmem:[#allocation4 + $0x28] sm:$0xff] }
 0x130   :  { %v306_v56 = vadd.f32 %v231_v54, %v160_v50  ;;  %v300_v61 = vpop.f32.mrb[0].mxu1 }
 0x131   :  { %v309_v59 = vmul.f32 0.5, %v305_v53  ;;  %v307_v1 = vadd.f32 %v300_v61, %v161_v55  ;;  %v302_v2 = vpop.f32.mrb[1].mxu1 }
 0x132   :  { %v310_v62 = vmul.f32 0.5, %v306_v56  ;;  %v308_v5 = vadd.f32 %v302_v2, %v162_v3  ;;  %v335_v56 = vld [vmem:[#allocation4 + $0x30] sm:$0xff]  ;;  %v336_v2 = vld [vmem:[#allocation4 + $0x38] sm:$0xff] }
 0x133   :  { %2270 = vtanh.f32 %v309_v59 }
 0x134   :  { %2272 = vtanh.f32 %v310_v62  ;;  %v312_v6 = vmul.f32 0.5, %v308_v5 }
 0x135   :  { %2274 = vtanh.f32 %v307_v1 }
 0x136   :  { %2276 = vtanh.f32 %v312_v6 }
 0x13d   :  { %v2271_v11 = vpop.eup %2270 }
 0x13e   :  { %v2273_v13 = vpop.eup %2272  ;;  %v317_v14 = vmul.f32 0.5, %v2271_v11 }
 0x13f   :  { %v2275_v19 = vpop.eup %2274  ;;  %v318_v20 = vmul.f32 0.5, %v2273_v13 }
 0x140   :  { %v321_v21 = vadd.f32 0.5, %v317_v14  ;;  %v2277_v33 = vpop.eup %2276 }
 0x141   :  { %v322_v23 = vadd.f32 0.5, %v318_v20  ;;  %v320_v35 = vmul.f32 0.5, %v2277_v33 }
 0x142   :  { %v326_v24 = vmul.f32 %v2275_v19, %v321_v21 }
 0x143   :  { %v325_v28 = vmul.f32 0.0, %v322_v23  ;;  %v324_v37 = vadd.f32 0.5, %v320_v35 }
 0x145   :  { %v2659_v31 = vadd.f32 %v326_v24, %v325_v28 }
 0x147   :  { %2278 = vtanh.f32 %v2659_v31 }
 0x151   :  { %v2279_v38 = vpop.eup %2278 }
 0x152   :  { %v329_v43 = vmul.f32 %v2279_v38, %v324_v37 }
 0x154   :  { %402 = vmatmul.mubr.f32.vlgmr.msra.gmra.mrb[2].mxu0 %v329_v43  ;;  %473 = vmatmul.mubr.f32.vlgmr.msra.gmra.mrb[2].mxu1 %v329_v43 }
 0x155   :  { %1854 = vmatpush1.bf16.msra.mxu0 %v2527_v8  ;;  %1886 = vmatpush1.bf16.msra.mxu1 %v2537_v18 }
 0x156   :  { %1856 = vmatprep.subr.bf16.mxu0 %v2529_v9  ;;  %1888 = vmatprep.subr.bf16.mxu1 %v2543_v26 }
 0x157   :  { %575 = vmatprep.mubr.f32.mxu0 %v2451_v0  ;;  %646 = vmatprep.mubr.f32.mxu1 %v2451_v0 }
 0x159   :  { %1858 = vmatpush1.bf16.msra.mxu0 %v2533_v16  ;;  %1890 = vmatpush1.bf16.msra.mxu1 %v2546_v30 }
 0x15a   :  { %1860 = vmatprep.subr.bf16.mxu0 %v2540_v22  ;;  %1892 = vmatprep.subr.bf16.mxu1 %v2555_v39 }
 0x15d   :  { %1862 = vmatpush1.bf16.msra.mxu0 %v2549_v32  ;;  %1894 = vmatpush1.bf16.msra.mxu1 %v2558_v44 }
 0x15e   :  { %1864 = vmatprep.subr.bf16.mxu0 %v2553_v36  ;;  %1896 = vmatprep.subr.bf16.mxu1 %v2564_v48 }
 0x161   :  { %1866 = vmatpush1.bf16.msra.mxu0 %v2561_v46  ;;  %1898 = vmatpush1.bf16.msra.mxu1 %v2570_v57 }
 0x162   :  { %1868 = vmatprep.subr.bf16.mxu0 %v2567_v51  ;;  %1900 = vmatprep.subr.bf16.mxu1 %v2576_v60 }
 0x165   :  { %1870 = vmatpush1.bf16.msra.mxu0 %v2573_v58  ;;  %1902 = vmatpush1.bf16.msra.mxu1 %v2582_v7 }
 0x166   :  { %1872 = vmatprep.subr.bf16.mxu0 %v2579_v63  ;;  %1904 = vmatprep.subr.bf16.mxu1 %v2588_v12 }
 0x169   :  { %1874 = vmatpush1.bf16.msra.mxu0 %v2585_v10  ;;  %1906 = vmatpush1.bf16.msra.mxu1 %v2594_v25 }
 0x16a   :  { %1876 = vmatprep.subr.bf16.mxu0 %v2591_v15  ;;  %1908 = vmatprep.subr.bf16.mxu1 %v2600_v29 }
 0x16d   :  { %1878 = vmatpush1.bf16.msra.mxu0 %v2597_v27  ;;  %1910 = vmatpush1.bf16.msra.mxu1 %v2606_v40 }
 0x16e   :  { %1880 = vmatprep.subr.bf16.mxu0 %v2603_v34  ;;  %1912 = vmatprep.subr.bf16.mxu1 %v2612_v42 }
 0x171   :  { %1882 = vmatpush1.bf16.msra.mxu0 %v2609_v41  ;;  %1914 = vmatpush1.bf16.msra.mxu1 %v2616_v47 }
 0x172   :  { %1916 = vmatprep.subr.bf16.mxu0 %v2525_v4  ;;  %1948 = vmatprep.subr.bf16.mxu1 %v2535_v17 }
 0x227   :  { %v403_v50 = vpop.f32.mrb[2].mxu0  ;;  %v474_v52 = vpop.f32.mrb[2].mxu1 }
 0x228   :  { %v479_v53 = vadd.f32 %v403_v50, %v333_v45  ;;  %v405_v54 = vpop.f32.mrb[3].mxu0  ;;  %v476_v55 = vpop.f32.mrb[3].mxu1  ;;  %v481_v1 = vadd.f32 %v474_v52, %v335_v56  ;;  %v508_v45 = vld [vmem:[#allocation4 + $0x48] sm:$0xff] }
 0x229   :  { %v480_v59 = vadd.f32 %v405_v54, %v334_v49  ;;  %v482_v3 = vadd.f32 %v476_v55, %v336_v2  ;;  %v509_v55 = vld [vmem:[#allocation4 + $0x50] sm:$0xff] }
 0x22a   :  { %v483_v61 = vmul.f32 0.5, %v479_v53 }
 0x22b   :  { %v484_v62 = vmul.f32 0.5, %v480_v59  ;;  %v486_v5 = vmul.f32 0.5, %v482_v3 }
 0x22c   :  { %2280 = vtanh.f32 %v483_v61 }
 0x22d   :  { %2282 = vtanh.f32 %v484_v62 }
 0x22e   :  { %2284 = vtanh.f32 %v481_v1  ;;  %v510_v1 = vld [vmem:[#allocation4 + $0x58] sm:$0xff] }
 0x22f   :  { %2286 = vtanh.f32 %v486_v5 }
 0x236   :  { %v2281_v6 = vpop.eup %2280 }
 0x237   :  { %v2283_v11 = vpop.eup %2282  ;;  %v491_v13 = vmul.f32 0.5, %v2281_v6 }
 0x238   :  { %v492_v14 = vmul.f32 0.5, %v2283_v11  ;;  %v2285_v20 = vpop.eup %2284 }
 0x239   :  { %v495_v19 = vadd.f32 0.5, %v491_v13  ;;  %v2287_v33 = vpop.eup %2286 }
 0x23a   :  { %v496_v21 = vadd.f32 0.5, %v492_v14  ;;  %v494_v35 = vmul.f32 0.5, %v2287_v33 }
 0x23b   :  { %v500_v23 = vmul.f32 %v2285_v20, %v495_v19 }
 0x23c   :  { %v499_v24 = vmul.f32 %v496_v21, %v2659_v31  ;;  %v498_v37 = vadd.f32 0.5, %v494_v35  ;;  %v507_v31 = vld [vmem:[#allocation4 + $0x40] sm:$0xff] }
 0x23e   :  { %v2697_v28 = vadd.f32 %v500_v23, %v499_v24 }
 0x240   :  { %2288 = vtanh.f32 %v2697_v28 }
 0x24a   :  { %v2289_v38 = vpop.eup %2288 }
 0x24b   :  { %v503_v43 = vmul.f32 %v2289_v38, %v498_v37 }
 0x24d   :  { %576 = vmatmul.mubr.f32.vlgmr.msra.gmra.mrb[4].mxu0 %v503_v43  ;;  %647 = vmatmul.mubr.f32.vlgmr.msra.gmra.mrb[4].mxu1 %v503_v43 }
 0x24e   :  { %1918 = vmatpush1.bf16.msra.mxu0 %v2527_v8  ;;  %1950 = vmatpush1.bf16.msra.mxu1 %v2537_v18 }
 0x24f   :  { %1920 = vmatprep.subr.bf16.mxu0 %v2529_v9  ;;  %1952 = vmatprep.subr.bf16.mxu1 %v2543_v26 }
 0x250   :  { %749 = vmatprep.mubr.f32.mxu0 %v2451_v0  ;;  %820 = vmatprep.mubr.f32.mxu1 %v2451_v0 }
 0x252   :  { %1922 = vmatpush1.bf16.msra.mxu0 %v2533_v16  ;;  %1954 = vmatpush1.bf16.msra.mxu1 %v2546_v30 }
 0x253   :  { %1924 = vmatprep.subr.bf16.mxu0 %v2540_v22  ;;  %1956 = vmatprep.subr.bf16.mxu1 %v2555_v39 }
 0x256   :  { %1926 = vmatpush1.bf16.msra.mxu0 %v2549_v32  ;;  %1958 = vmatpush1.bf16.msra.mxu1 %v2558_v44 }
 0x257   :  { %1928 = vmatprep.subr.bf16.mxu0 %v2553_v36  ;;  %1960 = vmatprep.subr.bf16.mxu1 %v2564_v48 }
 0x25a   :  { %1930 = vmatpush1.bf16.msra.mxu0 %v2561_v46  ;;  %1962 = vmatpush1.bf16.msra.mxu1 %v2570_v57 }
 0x25b   :  { %1932 = vmatprep.subr.bf16.mxu0 %v2567_v51  ;;  %1964 = vmatprep.subr.bf16.mxu1 %v2576_v60 }
 0x25e   :  { %1934 = vmatpush1.bf16.msra.mxu0 %v2573_v58  ;;  %1966 = vmatpush1.bf16.msra.mxu1 %v2582_v7 }
 0x25f   :  { %1936 = vmatprep.subr.bf16.mxu0 %v2579_v63  ;;  %1968 = vmatprep.subr.bf16.mxu1 %v2588_v12 }
 0x262   :  { %1938 = vmatpush1.bf16.msra.mxu0 %v2585_v10  ;;  %1970 = vmatpush1.bf16.msra.mxu1 %v2594_v25 }
 0x263   :  { %1940 = vmatprep.subr.bf16.mxu0 %v2591_v15  ;;  %1972 = vmatprep.subr.bf16.mxu1 %v2600_v29 }
 0x266   :  { %1942 = vmatpush1.bf16.msra.mxu0 %v2597_v27  ;;  %1974 = vmatpush1.bf16.msra.mxu1 %v2606_v40 }
 0x267   :  { %1944 = vmatprep.subr.bf16.mxu0 %v2603_v34  ;;  %1976 = vmatprep.subr.bf16.mxu1 %v2612_v42 }
 0x26a   :  { %1946 = vmatpush1.bf16.msra.mxu0 %v2609_v41  ;;  %1978 = vmatpush1.bf16.msra.mxu1 %v2616_v47 }
 0x26b   :  { %1980 = vmatprep.subr.bf16.mxu0 %v2525_v4  ;;  %2012 = vmatprep.subr.bf16.mxu1 %v2535_v17 }
 0x320   :  { %v577_v49 = vpop.f32.mrb[4].mxu0  ;;  %v648_v50 = vpop.f32.mrb[4].mxu1 }
 0x321   :  { %v653_v52 = vadd.f32 %v577_v49, %v507_v31  ;;  %v579_v53 = vpop.f32.mrb[5].mxu0  ;;  %v650_v54 = vpop.f32.mrb[5].mxu1  ;;  %v655_v62 = vadd.f32 %v648_v50, %v509_v55  ;;  %v682_v31 = vld [vmem:[#allocation4 + $0x68] sm:$0xff] }
 0x322   :  { %v654_v56 = vadd.f32 %v579_v53, %v508_v45  ;;  %v656_v2 = vadd.f32 %v650_v54, %v510_v1  ;;  %v683_v54 = vld [vmem:[#allocation4 + $0x70] sm:$0xff] }
 0x323   :  { %v657_v59 = vmul.f32 0.5, %v653_v52 }
 0x324   :  { %v658_v61 = vmul.f32 0.5, %v654_v56  ;;  %v660_v3 = vmul.f32 0.5, %v656_v2 }
 0x325   :  { %2290 = vtanh.f32 %v657_v59 }
 0x326   :  { %2292 = vtanh.f32 %v658_v61 }
 0x327   :  { %2294 = vtanh.f32 %v655_v62  ;;  %v684_v62 = vld [vmem:[#allocation4 + $0x78] sm:$0xff] }
 0x328   :  { %2296 = vtanh.f32 %v660_v3 }
 0x32f   :  { %v2291_v5 = vpop.eup %2290 }
 0x330   :  { %v2293_v6 = vpop.eup %2292  ;;  %v665_v11 = vmul.f32 0.5, %v2291_v5 }
 0x331   :  { %v666_v13 = vmul.f32 0.5, %v2293_v6  ;;  %v2295_v19 = vpop.eup %2294 }
 0x332   :  { %v669_v14 = vadd.f32 0.5, %v665_v11  ;;  %v2297_v33 = vpop.eup %2296 }
 0x333   :  { %v670_v20 = vadd.f32 0.5, %v666_v13  ;;  %v668_v35 = vmul.f32 0.5, %v2297_v33 }
 0x334   :  { %v674_v21 = vmul.f32 %v2295_v19, %v669_v14 }
 0x335   :  { %v673_v23 = vmul.f32 %v670_v20, %v2697_v28  ;;  %v672_v37 = vadd.f32 0.5, %v668_v35  ;;  %v681_v28 = vld [vmem:[#allocation4 + $0x60] sm:$0xff] }
 0x337   :  { %v2735_v24 = vadd.f32 %v674_v21, %v673_v23 }
 0x339   :  { %2298 = vtanh.f32 %v2735_v24 }
 0x343   :  { %v2299_v38 = vpop.eup %2298 }
 0x344   :  { %v677_v43 = vmul.f32 %v2299_v38, %v672_v37 }
 0x346   :  { %750 = vmatmul.mubr.f32.vlgmr.msra.gmra.mrb[6].mxu0 %v677_v43  ;;  %821 = vmatmul.mubr.f32.vlgmr.msra.gmra.mrb[6].mxu1 %v677_v43 }
 0x347   :  { %1982 = vmatpush1.bf16.msra.mxu0 %v2527_v8  ;;  %2014 = vmatpush1.bf16.msra.mxu1 %v2537_v18 }
 0x348   :  { %1984 = vmatprep.subr.bf16.mxu0 %v2529_v9  ;;  %2016 = vmatprep.subr.bf16.mxu1 %v2543_v26 }
 0x349   :  { %923 = vmatprep.mubr.f32.mxu0 %v2451_v0  ;;  %994 = vmatprep.mubr.f32.mxu1 %v2451_v0 }
 0x34b   :  { %1986 = vmatpush1.bf16.msra.mxu0 %v2533_v16  ;;  %2018 = vmatpush1.bf16.msra.mxu1 %v2546_v30 }
 0x34c   :  { %1988 = vmatprep.subr.bf16.mxu0 %v2540_v22  ;;  %2020 = vmatprep.subr.bf16.mxu1 %v2555_v39 }
 0x34f   :  { %1990 = vmatpush1.bf16.msra.mxu0 %v2549_v32  ;;  %2022 = vmatpush1.bf16.msra.mxu1 %v2558_v44 }
 0x350   :  { %1992 = vmatprep.subr.bf16.mxu0 %v2553_v36  ;;  %2024 = vmatprep.subr.bf16.mxu1 %v2564_v48 }
 0x353   :  { %1994 = vmatpush1.bf16.msra.mxu0 %v2561_v46  ;;  %2026 = vmatpush1.bf16.msra.mxu1 %v2570_v57 }
 0x354   :  { %1996 = vmatprep.subr.bf16.mxu0 %v2567_v51  ;;  %2028 = vmatprep.subr.bf16.mxu1 %v2576_v60 }
 0x357   :  { %1998 = vmatpush1.bf16.msra.mxu0 %v2573_v58  ;;  %2030 = vmatpush1.bf16.msra.mxu1 %v2582_v7 }
 0x358   :  { %2000 = vmatprep.subr.bf16.mxu0 %v2579_v63  ;;  %2032 = vmatprep.subr.bf16.mxu1 %v2588_v12 }
 0x35b   :  { %2002 = vmatpush1.bf16.msra.mxu0 %v2585_v10  ;;  %2034 = vmatpush1.bf16.msra.mxu1 %v2594_v25 }
 0x35c   :  { %2004 = vmatprep.subr.bf16.mxu0 %v2591_v15  ;;  %2036 = vmatprep.subr.bf16.mxu1 %v2600_v29 }
 0x35f   :  { %2006 = vmatpush1.bf16.msra.mxu0 %v2597_v27  ;;  %2038 = vmatpush1.bf16.msra.mxu1 %v2606_v40 }
 0x360   :  { %2008 = vmatprep.subr.bf16.mxu0 %v2603_v34  ;;  %2040 = vmatprep.subr.bf16.mxu1 %v2612_v42 }
 0x363   :  { %2010 = vmatpush1.bf16.msra.mxu0 %v2609_v41  ;;  %2042 = vmatpush1.bf16.msra.mxu1 %v2616_v47 }
 0x364   :  { %2044 = vmatprep.subr.bf16.mxu0 %v2525_v4  ;;  %2076 = vmatprep.subr.bf16.mxu1 %v2535_v17 }
 0x419   :  { %v751_v45 = vpop.f32.mrb[6].mxu0  ;;  %v822_v49 = vpop.f32.mrb[6].mxu1 }
 0x41a   :  { %v827_v50 = vadd.f32 %v751_v45, %v681_v28  ;;  %v753_v52 = vpop.f32.mrb[7].mxu0  ;;  %v824_v53 = vpop.f32.mrb[7].mxu1  ;;  %v829_v61 = vadd.f32 %v822_v49, %v683_v54  ;;  %v856_v28 = vld [vmem:[#allocation4 + $0x88] sm:$0xff] }
 0x41b   :  { %v828_v55 = vadd.f32 %v753_v52, %v682_v31  ;;  %v830_v1 = vadd.f32 %v824_v53, %v684_v62  ;;  %v857_v53 = vld [vmem:[#allocation4 + $0x90] sm:$0xff] }
 0x41c   :  { %v831_v56 = vmul.f32 0.5, %v827_v50 }
 0x41d   :  { %v832_v59 = vmul.f32 0.5, %v828_v55  ;;  %v834_v2 = vmul.f32 0.5, %v830_v1 }
 0x41e   :  { %2300 = vtanh.f32 %v831_v56 }
 0x41f   :  { %2302 = vtanh.f32 %v832_v59 }
 0x420   :  { %2304 = vtanh.f32 %v829_v61  ;;  %v858_v61 = vld [vmem:[#allocation4 + $0x98] sm:$0xff] }
 0x421   :  { %2306 = vtanh.f32 %v834_v2 }
 0x428   :  { %v2301_v3 = vpop.eup %2300 }
 0x429   :  { %v2303_v5 = vpop.eup %2302  ;;  %v839_v6 = vmul.f32 0.5, %v2301_v3 }
 0x42a   :  { %v840_v11 = vmul.f32 0.5, %v2303_v5  ;;  %v2305_v14 = vpop.eup %2304 }
 0x42b   :  { %v843_v13 = vadd.f32 0.5, %v839_v6  ;;  %v2307_v33 = vpop.eup %2306 }
 0x42c   :  { %v844_v19 = vadd.f32 0.5, %v840_v11  ;;  %v842_v35 = vmul.f32 0.5, %v2307_v33 }
 0x42d   :  { %v848_v20 = vmul.f32 %v2305_v14, %v843_v13 }
 0x42e   :  { %v847_v21 = vmul.f32 %v844_v19, %v2735_v24  ;;  %v846_v37 = vadd.f32 0.5, %v842_v35  ;;  %v855_v24 = vld [vmem:[#allocation4 + $0x80] sm:$0xff] }
 0x430   :  { %v2773_v23 = vadd.f32 %v848_v20, %v847_v21 }
 0x432   :  { %2308 = vtanh.f32 %v2773_v23 }
 0x43c   :  { %v2309_v38 = vpop.eup %2308 }
 0x43d   :  { %v851_v43 = vmul.f32 %v2309_v38, %v846_v37 }
 0x43f   :  { %924 = vmatmul.mubr.f32.vlgmr.msra.gmra.mrb[8].mxu0 %v851_v43  ;;  %995 = vmatmul.mubr.f32.vlgmr.msra.gmra.mrb[8].mxu1 %v851_v43 }
 0x440   :  { %2046 = vmatpush1.bf16.msra.mxu0 %v2527_v8  ;;  %2078 = vmatpush1.bf16.msra.mxu1 %v2537_v18 }
 0x441   :  { %2048 = vmatprep.subr.bf16.mxu0 %v2529_v9  ;;  %2080 = vmatprep.subr.bf16.mxu1 %v2543_v26 }
 0x442   :  { %1097 = vmatprep.mubr.f32.mxu0 %v2451_v0  ;;  %1168 = vmatprep.mubr.f32.mxu1 %v2451_v0 }
 0x444   :  { %2050 = vmatpush1.bf16.msra.mxu0 %v2533_v16  ;;  %2082 = vmatpush1.bf16.msra.mxu1 %v2546_v30 }
 0x445   :  { %2052 = vmatprep.subr.bf16.mxu0 %v2540_v22  ;;  %2084 = vmatprep.subr.bf16.mxu1 %v2555_v39 }
 0x448   :  { %2054 = vmatpush1.bf16.msra.mxu0 %v2549_v32  ;;  %2086 = vmatpush1.bf16.msra.mxu1 %v2558_v44 }
 0x449   :  { %2056 = vmatprep.subr.bf16.mxu0 %v2553_v36  ;;  %2088 = vmatprep.subr.bf16.mxu1 %v2564_v48 }
 0x44c   :  { %2058 = vmatpush1.bf16.msra.mxu0 %v2561_v46  ;;  %2090 = vmatpush1.bf16.msra.mxu1 %v2570_v57 }
 0x44d   :  { %2060 = vmatprep.subr.bf16.mxu0 %v2567_v51  ;;  %2092 = vmatprep.subr.bf16.mxu1 %v2576_v60 }
 0x450   :  { %2062 = vmatpush1.bf16.msra.mxu0 %v2573_v58  ;;  %2094 = vmatpush1.bf16.msra.mxu1 %v2582_v7 }
 0x451   :  { %2064 = vmatprep.subr.bf16.mxu0 %v2579_v63  ;;  %2096 = vmatprep.subr.bf16.mxu1 %v2588_v12 }
 0x454   :  { %2066 = vmatpush1.bf16.msra.mxu0 %v2585_v10  ;;  %2098 = vmatpush1.bf16.msra.mxu1 %v2594_v25 }
 0x455   :  { %2068 = vmatprep.subr.bf16.mxu0 %v2591_v15  ;;  %2100 = vmatprep.subr.bf16.mxu1 %v2600_v29 }
 0x458   :  { %2070 = vmatpush1.bf16.msra.mxu0 %v2597_v27  ;;  %2102 = vmatpush1.bf16.msra.mxu1 %v2606_v40 }
 0x459   :  { %2072 = vmatprep.subr.bf16.mxu0 %v2603_v34  ;;  %2104 = vmatprep.subr.bf16.mxu1 %v2612_v42 }
 0x45c   :  { %2074 = vmatpush1.bf16.msra.mxu0 %v2609_v41  ;;  %2106 = vmatpush1.bf16.msra.mxu1 %v2616_v47 }
 0x45d   :  { %2108 = vmatprep.subr.bf16.mxu0 %v2525_v4  ;;  %2140 = vmatprep.subr.bf16.mxu1 %v2535_v17 }
 0x512   :  { %v925_v31 = vpop.f32.mrb[8].mxu0  ;;  %v996_v45 = vpop.f32.mrb[8].mxu1 }
 0x513   :  { %v1001_v49 = vadd.f32 %v925_v31, %v855_v24  ;;  %v927_v50 = vpop.f32.mrb[9].mxu0  ;;  %v998_v52 = vpop.f32.mrb[9].mxu1  ;;  %v1003_v59 = vadd.f32 %v996_v45, %v857_v53  ;;  %v1030_v24 = vld [vmem:[#allocation4 + $0xa8] sm:$0xff] }
 0x514   :  { %v1002_v54 = vadd.f32 %v927_v50, %v856_v28  ;;  %v1004_v62 = vadd.f32 %v998_v52, %v858_v61  ;;  %v1031_v52 = vld [vmem:[#allocation4 + $0xb0] sm:$0xff] }
 0x515   :  { %v1005_v55 = vmul.f32 0.5, %v1001_v49 }
 0x516   :  { %v1006_v56 = vmul.f32 0.5, %v1002_v54  ;;  %v1008_v1 = vmul.f32 0.5, %v1004_v62 }
 0x517   :  { %2310 = vtanh.f32 %v1005_v55 }
 0x518   :  { %2312 = vtanh.f32 %v1006_v56 }
 0x519   :  { %2314 = vtanh.f32 %v1003_v59  ;;  %v1032_v59 = vld [vmem:[#allocation4 + $0xb8] sm:$0xff] }
 0x51a   :  { %2316 = vtanh.f32 %v1008_v1 }
 0x521   :  { %v2311_v2 = vpop.eup %2310 }
 0x522   :  { %v2313_v3 = vpop.eup %2312  ;;  %v1013_v5 = vmul.f32 0.5, %v2311_v2 }
 0x523   :  { %v1014_v6 = vmul.f32 0.5, %v2313_v3  ;;  %v2315_v13 = vpop.eup %2314 }
 0x524   :  { %v1017_v11 = vadd.f32 0.5, %v1013_v5  ;;  %v2317_v33 = vpop.eup %2316 }
 0x525   :  { %v1018_v14 = vadd.f32 0.5, %v1014_v6  ;;  %v1016_v35 = vmul.f32 0.5, %v2317_v33 }
 0x526   :  { %v1022_v19 = vmul.f32 %v2315_v13, %v1017_v11 }
 0x527   :  { %v1021_v20 = vmul.f32 %v1018_v14, %v2773_v23  ;;  %v1020_v37 = vadd.f32 0.5, %v1016_v35  ;;  %v1029_v23 = vld [vmem:[#allocation4 + $0xa0] sm:$0xff] }
 0x529   :  { %v2811_v21 = vadd.f32 %v1022_v19, %v1021_v20 }
 0x52b   :  { %2318 = vtanh.f32 %v2811_v21 }
 0x535   :  { %v2319_v38 = vpop.eup %2318 }
 0x536   :  { %v1025_v43 = vmul.f32 %v2319_v38, %v1020_v37  ;;  %v1554_v38 = vld [vmem:[#allocation9 + $0x8] sm:$0xff] }
 0x538   :  { %1098 = vmatmul.mubr.f32.vlgmr.msra.gmra.mrb[10].mxu0 %v1025_v43  ;;  %1169 = vmatmul.mubr.f32.vlgmr.msra.gmra.mrb[10].mxu1 %v1025_v43 }
 0x539   :  { %2110 = vmatpush1.bf16.msra.mxu0 %v2527_v8  ;;  %2142 = vmatpush1.bf16.msra.mxu1 %v2537_v18 }
 0x53a   :  { %2112 = vmatprep.subr.bf16.mxu0 %v2529_v9  ;;  %2144 = vmatprep.subr.bf16.mxu1 %v2543_v26 }
 0x53b   :  { %1271 = vmatprep.mubr.f32.mxu0 %v2451_v0  ;;  %1342 = vmatprep.mubr.f32.mxu1 %v2451_v0 }
 0x53d   :  { %2114 = vmatpush1.bf16.msra.mxu0 %v2533_v16  ;;  %2146 = vmatpush1.bf16.msra.mxu1 %v2546_v30 }
 0x53e   :  { %2116 = vmatprep.subr.bf16.mxu0 %v2540_v22  ;;  %2148 = vmatprep.subr.bf16.mxu1 %v2555_v39 }
 0x541   :  { %2118 = vmatpush1.bf16.msra.mxu0 %v2549_v32  ;;  %2150 = vmatpush1.bf16.msra.mxu1 %v2558_v44 }
 0x542   :  { %2120 = vmatprep.subr.bf16.mxu0 %v2553_v36  ;;  %2152 = vmatprep.subr.bf16.mxu1 %v2564_v48 }
 0x545   :  { %2122 = vmatpush1.bf16.msra.mxu0 %v2561_v46  ;;  %2154 = vmatpush1.bf16.msra.mxu1 %v2570_v57 }
 0x546   :  { %2124 = vmatprep.subr.bf16.mxu0 %v2567_v51  ;;  %2156 = vmatprep.subr.bf16.mxu1 %v2576_v60 }
 0x549   :  { %2126 = vmatpush1.bf16.msra.mxu0 %v2573_v58  ;;  %2158 = vmatpush1.bf16.msra.mxu1 %v2582_v7 }
 0x54a   :  { %2128 = vmatprep.subr.bf16.mxu0 %v2579_v63  ;;  %2160 = vmatprep.subr.bf16.mxu1 %v2588_v12 }
 0x54d   :  { %2130 = vmatpush1.bf16.msra.mxu0 %v2585_v10  ;;  %2162 = vmatpush1.bf16.msra.mxu1 %v2594_v25 }
 0x54e   :  { %2132 = vmatprep.subr.bf16.mxu0 %v2591_v15  ;;  %2164 = vmatprep.subr.bf16.mxu1 %v2600_v29 }
 0x551   :  { %2134 = vmatpush1.bf16.msra.mxu0 %v2597_v27  ;;  %2166 = vmatpush1.bf16.msra.mxu1 %v2606_v40 }
 0x552   :  { %2136 = vmatprep.subr.bf16.mxu0 %v2603_v34  ;;  %2168 = vmatprep.subr.bf16.mxu1 %v2612_v42 }
 0x555   :  { %2138 = vmatpush1.bf16.msra.mxu0 %v2609_v41  ;;  %2170 = vmatpush1.bf16.msra.mxu1 %v2616_v47 }
 0x556   :  { %2172 = vmatprep.subr.bf16.mxu0 %v2525_v4  ;;  %2204 = vmatprep.subr.bf16.mxu1 %v2535_v17 }
 0x60b   :  { %v1099_v28 = vpop.f32.mrb[10].mxu0  ;;  %v1170_v31 = vpop.f32.mrb[10].mxu1 }
 0x60c   :  { %v1175_v45 = vadd.f32 %v1099_v28, %v1029_v23  ;;  %v1101_v49 = vpop.f32.mrb[11].mxu0  ;;  %v1172_v50 = vpop.f32.mrb[11].mxu1  ;;  %v1177_v56 = vadd.f32 %v1170_v31, %v1031_v52  ;;  %v2452_v23 = vmov 0.0|0.0   ;;  %v1556_v28 = vld [vmem:[#allocation9 + $0x18] sm:$0xff]  ;;  %v1559_v52 = vld [vmem:[#allocation9 + $0x30] sm:$0xff] }
 0x60d   :  { %v1176_v53 = vadd.f32 %v1101_v49, %v1030_v24  ;;  %v1178_v61 = vadd.f32 %v1172_v50, %v1032_v59  ;;  %v1555_v24 = vld [vmem:[#allocation9 + $0x10] sm:$0xff]  ;;  %v1558_v49 = vld [vmem:[#allocation9 + $0x28] sm:$0xff] }
 0x60e   :  { %v1179_v54 = vmul.f32 0.5, %v1175_v45  ;;  %v2239_v31 = vpack.c.bf16 %v1556_v28, %v1555_v24  ;;  %v1557_v45 = vld [vmem:[#allocation9 + $0x20] sm:$0xff] }
 0x60f   :  { %v1180_v55 = vmul.f32 0.5, %v1176_v53  ;;  %v1182_v4 = vmul.f32 0.5, %v1178_v61  ;;  %v2242_v50 = vpack.c.bf16 %v1558_v49, %v1557_v45  ;;  %v1560_v53 = vld [vmem:[#allocation9 + $0x38] sm:$0xff]  ;;  %v1563_v61 = vld [vmem:[#allocation9 + $0x50] sm:$0xff] }
 0x610   :  { %2320 = vtanh.f32 %v1179_v54  ;;  %v2245_v54 = vpack.c.bf16 %v1560_v53, %v1559_v52 }
 0x611   :  { %2322 = vtanh.f32 %v1180_v55  ;;  %v1561_v55 = vld [vmem:[#allocation9 + $0x40] sm:$0xff] }
 0x612   :  { %2324 = vtanh.f32 %v1177_v56  ;;  %v1562_v56 = vld [vmem:[#allocation9 + $0x48] sm:$0xff] }
 0x613   :  { %2326 = vtanh.f32 %v1182_v4  ;;  %v2248_v59 = vpack.c.bf16 %v1562_v56, %v1561_v55  ;;  %v1564_v4 = vld [vmem:[#allocation9 + $0x58] sm:$0xff] }
 0x61a   :  { %v2321_v62 = vpop.eup %2320 }
 0x61b   :  { %v2323_v17 = vpop.eup %2322  ;;  %v1187_v1 = vmul.f32 0.5, %v2321_v62  ;;  %v2251_v62 = vpack.c.bf16 %v1564_v4, %v1563_v61 }
 0x61c   :  { %v1188_v2 = vmul.f32 0.5, %v2323_v17  ;;  %v2325_v5 = vpop.eup %2324  ;;  %v1565_v17 = vld [vmem:[#allocation9 + $0x60] sm:$0xff] }
 0x61d   :  { %v1191_v3 = vadd.f32 0.5, %v1187_v1  ;;  %v2327_v19 = vpop.eup %2326  ;;  %v1566_v1 = vld [vmem:[#allocation9 + $0x68] sm:$0xff] }
 0x61e   :  { %v1192_v6 = vadd.f32 0.5, %v1188_v2  ;;  %v1190_v20 = vmul.f32 0.5, %v2327_v19  ;;  %v2254_v2 = vpack.c.bf16 %v1566_v1, %v1565_v17 }
 0x61f   :  { %v1196_v11 = vmul.f32 %v2325_v5, %v1191_v3  ;;  %v1567_v3 = vld [vmem:[#allocation9 + $0x70] sm:$0xff]  ;;  %v1568_v5 = vld [vmem:[#allocation9 + $0x78] sm:$0xff] }
 0x620   :  { %v1195_v13 = vmul.f32 %v1192_v6, %v2811_v21  ;;  %v1194_v33 = vadd.f32 0.5, %v1190_v20  ;;  %v1553_v21 = vld [vmem:[#allocation9] sm:$0xff]  ;;  %v2257_v6 = vpack.c.bf16 %v1568_v5, %v1567_v3 }
 0x621   :  { %v2236_v43 = vpack.c.bf16 %v1554_v38, %v1553_v21 }
 0x622   :  { %v2849_v14 = vadd.f32 %v1196_v11, %v1195_v13  ;;  %v1377_v11 = vld [vmem:[#allocation4 + $0xe0] sm:$0xff]  ;;  %v1378_v13 = vld [vmem:[#allocation4 + $0xe8] sm:$0xff] }
 0x624   :  { %2328 = vtanh.f32 %v2849_v14 }
 0x62e   :  { %v2329_v35 = vpop.eup %2328 }
 0x62f   :  { %v1199_v37 = vmul.f32 %v2329_v35, %v1194_v33 }
 0x631   :  { %1272 = vmatmul.mubr.f32.vlgmr.msra.gmra.mrb[12].mxu0 %v1199_v37  ;;  %1343 = vmatmul.mubr.f32.vlgmr.msra.gmra.mrb[12].mxu1 %v1199_v37  ;;  %v1379_v37 = vld [vmem:[#allocation4 + $0xf0] sm:$0xff] }
 0x632   :  { %2174 = vmatpush1.bf16.msra.mxu0 %v2527_v8  ;;  %2206 = vmatpush1.bf16.msra.mxu1 %v2537_v18  ;;  %v1203_v8 = vld [vmem:[#allocation4 + $0xc0] sm:$0xff] }
 0x633   :  { %2176 = vmatprep.subr.bf16.mxu0 %v2529_v9  ;;  %2208 = vmatprep.subr.bf16.mxu1 %v2543_v26  ;;  %v1204_v9 = vld [vmem:[#allocation4 + $0xc8] sm:$0xff] }
 0x634   :  { %1445 = vmatprep.mubr.f32.mxu0 %v2451_v0  ;;  %1516 = vmatprep.mubr.f32.mxu1 %v2451_v0 }
 0x636   :  { %2178 = vmatpush1.bf16.msra.mxu0 %v2533_v16  ;;  %2210 = vmatpush1.bf16.msra.mxu1 %v2546_v30 }
 0x637   :  { %2180 = vmatprep.subr.bf16.mxu0 %v2540_v22  ;;  %2212 = vmatprep.subr.bf16.mxu1 %v2555_v39 }
 0x63a   :  { %2182 = vmatpush1.bf16.msra.mxu0 %v2549_v32  ;;  %2214 = vmatpush1.bf16.msra.mxu1 %v2558_v44  ;;  %v1205_v32 = vld [vmem:[#allocation4 + $0xd0] sm:$0xff] }
 0x63b   :  { %2184 = vmatprep.subr.bf16.mxu0 %v2553_v36  ;;  %2216 = vmatprep.subr.bf16.mxu1 %v2564_v48  ;;  %v1206_v48 = vld [vmem:[#allocation4 + $0xd8] sm:$0xff] }
 0x63e   :  { %2186 = vmatpush1.bf16.msra.mxu0 %v2561_v46  ;;  %2218 = vmatpush1.bf16.msra.mxu1 %v2570_v57 }
 0x63f   :  { %2188 = vmatprep.subr.bf16.mxu0 %v2567_v51  ;;  %2220 = vmatprep.subr.bf16.mxu1 %v2576_v60 }
 0x642   :  { %2190 = vmatpush1.bf16.msra.mxu0 %v2573_v58  ;;  %2222 = vmatpush1.bf16.msra.mxu1 %v2582_v7 }
 0x643   :  { %2192 = vmatprep.subr.bf16.mxu0 %v2579_v63  ;;  %2224 = vmatprep.subr.bf16.mxu1 %v2588_v12 }
 0x646   :  { %2194 = vmatpush1.bf16.msra.mxu0 %v2585_v10  ;;  %2226 = vmatpush1.bf16.msra.mxu1 %v2594_v25 }
 0x647   :  { %2196 = vmatprep.subr.bf16.mxu0 %v2591_v15  ;;  %2228 = vmatprep.subr.bf16.mxu1 %v2600_v29 }
 0x64a   :  { %2198 = vmatpush1.bf16.msra.mxu0 %v2597_v27  ;;  %2230 = vmatpush1.bf16.msra.mxu1 %v2606_v40 }
 0x64b   :  { %2200 = vmatprep.subr.bf16.mxu0 %v2603_v34  ;;  %2232 = vmatprep.subr.bf16.mxu1 %v2612_v42 }
 0x64e   :  { %2202 = vmatpush1.bf16.msra.mxu0 %v2609_v41  ;;  %2234 = vmatpush1.bf16.msra.mxu1 %v2616_v47 }
 0x64f   :  { %2235 = vmatprep.subr.bf16.mxu0 %v2452_v23 }
 0x704   :  { %v1273_v16 = vpop.f32.mrb[12].mxu0  ;;  %v1344_v18 = vpop.f32.mrb[12].mxu1 }
 0x705   :  { %v1349_v22 = vadd.f32 %v1273_v16, %v1203_v8  ;;  %v1275_v26 = vpop.f32.mrb[13].mxu0  ;;  %v1346_v30 = vpop.f32.mrb[13].mxu1  ;;  %v1351_v46 = vadd.f32 %v1344_v18, %v1205_v32 }
 0x706   :  { %v1350_v36 = vadd.f32 %v1275_v26, %v1204_v9  ;;  %v1352_v51 = vadd.f32 %v1346_v30, %v1206_v48 }
 0x707   :  { %v1353_v39 = vmul.f32 0.5, %v1349_v22  ;;  %v1380_v22 = vld [vmem:[#allocation4 + $0xf8] sm:$0xff] }
 0x708   :  { %v1354_v44 = vmul.f32 0.5, %v1350_v36  ;;  %v1356_v57 = vmul.f32 0.5, %v1352_v51 }
 0x709   :  { %2330 = vtanh.f32 %v1353_v39 }
 0x70a   :  { %2332 = vtanh.f32 %v1354_v44 }
 0x70b   :  { %2334 = vtanh.f32 %v1351_v46 }
 0x70c   :  { %2336 = vtanh.f32 %v1356_v57 }
 0x713   :  { %v2331_v58 = vpop.eup %2330 }
 0x714   :  { %v2333_v60 = vpop.eup %2332  ;;  %v1361_v63 = vmul.f32 0.5, %v2331_v58 }
 0x715   :  { %v1362_v7 = vmul.f32 0.5, %v2333_v60  ;;  %v2335_v12 = vpop.eup %2334 }
 0x716   :  { %v1365_v10 = vadd.f32 0.5, %v1361_v63  ;;  %v2337_v34 = vpop.eup %2336 }
 0x717   :  { %v1366_v15 = vadd.f32 0.5, %v1362_v7  ;;  %v1364_v40 = vmul.f32 0.5, %v2337_v34 }
 0x718   :  { %v1370_v25 = vmul.f32 %v2335_v12, %v1365_v10 }
 0x719   :  { %v1369_v27 = vmul.f32 %v1366_v15, %v2849_v14  ;;  %v1368_v41 = vadd.f32 0.5, %v1364_v40  ;;  %v1670_v15 = vld [vmem:[%s2908_s3] ss:$0 sm:$0xff] }
 0x71b   :  { %v2885_v29 = vadd.f32 %v1370_v25, %v1369_v27 }
 0x71d   :  { %2338 = vtanh.f32 %v2885_v29 }
 0x727   :  { %v2339_v42 = vpop.eup %2338 }
 0x728   :  { %v1373_v47 = vmul.f32 %v2339_v42, %v1368_v41 }
 0x72a   :  { %1446 = vmatmul.mubr.f32.vlgmr.msra.gmra.mrb[14].mxu0 %v1373_v47  ;;  %1517 = vmatmul.mubr.f32.vlgmr.msra.gmra.mrb[14].mxu1 %v1373_v47 }
 0x72b   :  { %2237 = vmatpush3.bf16.msra.mxu0 %v2236_v43  ;;  %1720 = vmatprep.mubr.msk.f32.mxu0 %vm2453_vm0, %v2451_v0 }
 0x72c   :  { %2238 = vmatprep.subr.bf16.mxu0 %v2452_v23 }
 0x72f   :  { %2240 = vmatpush3.bf16.msra.mxu0 %v2239_v31 }
 0x730   :  { %2241 = vmatprep.subr.bf16.mxu0 %v2452_v23 }
 0x733   :  { %2243 = vmatpush3.bf16.msra.mxu0 %v2242_v50 }
 0x734   :  { %2244 = vmatprep.subr.bf16.mxu0 %v2452_v23 }
 0x737   :  { %2246 = vmatpush3.bf16.msra.mxu0 %v2245_v54 }
 0x738   :  { %2247 = vmatprep.subr.bf16.mxu0 %v2452_v23 }
 0x73b   :  { %2249 = vmatpush3.bf16.msra.mxu0 %v2248_v59 }
 0x73c   :  { %2250 = vmatprep.subr.bf16.mxu0 %v2452_v23 }
 0x73f   :  { %2252 = vmatpush3.bf16.msra.mxu0 %v2251_v62 }
 0x740   :  { %2253 = vmatprep.subr.bf16.mxu0 %v2452_v23 }
 0x743   :  { %2255 = vmatpush3.bf16.msra.mxu0 %v2254_v2 }
 0x744   :  { %2256 = vmatprep.subr.bf16.mxu0 %v2452_v23 }
 0x747   :  { %2258 = vmatpush3.bf16.msra.mxu0 %v2257_v6 }
 0x7fd   :  { %v1447_v14 = vpop.f32.mrb[14].mxu0  ;;  %v1518_v19 = vpop.f32.mrb[14].mxu1 }
 0x7fe   :  { %v1523_v20 = vadd.f32 %v1447_v14, %v1377_v11  ;;  %v1449_v33 = vpop.f32.mrb[15].mxu0  ;;  %v1520_v35 = vpop.f32.mrb[15].mxu1  ;;  %v1525_v18 = vadd.f32 %v1518_v19, %v1379_v37 }
 0x7ff   :  { %v1524_v8 = vadd.f32 %v1449_v33, %v1378_v13  ;;  %v1526_v26 = vadd.f32 %v1520_v35, %v1380_v22 }
 0x800   :  { %v1527_v9 = vmul.f32 0.5, %v1523_v20 }
 0x801   :  { %v1528_v16 = vmul.f32 0.5, %v1524_v8  ;;  %v1530_v30 = vmul.f32 0.5, %v1526_v26 }
 0x802   :  { %2340 = vtanh.f32 %v1527_v9 }
 0x803   :  { %2342 = vtanh.f32 %v1528_v16 }
 0x804   :  { %2344 = vtanh.f32 %v1525_v18 }
 0x805   :  { %2346 = vtanh.f32 %v1530_v30 }
 0x80c   :  { %v2341_v32 = vpop.eup %2340 }
 0x80d   :  { %v2343_v0 = vpop.eup %2342  ;;  %v1535_v36 = vmul.f32 0.5, %v2341_v32 }
 0x80e   :  { %v1536_v39 = vmul.f32 0.5, %v2343_v0  ;;  %v2345_v46 = vpop.eup %2344 }
 0x80f   :  { %v1539_v44 = vadd.f32 0.5, %v1535_v36  ;;  %v2347_v60 = vpop.eup %2346 }
 0x810   :  { %v1540_v48 = vadd.f32 0.5, %v1536_v39  ;;  %v1538_v63 = vmul.f32 0.5, %v2347_v60 }
 0x811   :  { %v1544_v51 = vmul.f32 %v2345_v46, %v1539_v44 }
 0x812   :  { %v1543_v57 = vmul.f32 %v1540_v48, %v2885_v29  ;;  %v1542_v7 = vadd.f32 0.5, %v1538_v63 }
 0x814   :  { %v1545_v58 = vadd.f32 %v1544_v51, %v1543_v57 }
 0x816   :  { %2348 = vtanh.f32 %v1545_v58 }
 0x820   :  { %v2349_v10 = vpop.eup %2348 }
 0x821   :  { %v1547_v12 = vmul.f32 %v2349_v10, %v1542_v7 }
 0x823   :  { %1721 = vmatmul.mubr.f32.vlgmr.msra.gmra.mrb[16].mxu0 %v1547_v12 }
 0x8f6   :  { %v1642_v25 = vpop.f32.mrb[16].mxu0 }
 0x8f7   :  { %v1643_v27 = vadd.f32 %v1670_v15, %v1642_v25  ;;  %v1722_v34 = vpop.f32.mrb[17].mxu0 }
 0x8f9   :  { %1646 = vst [vmem:[#allocation10] sm:$0xff] %v1643_v27 }
 0x8fa   :  { %2427 = shalt.err (!%p2424_p0)
}
 0x8fb   :  { %s2428_s7 = scalar_lea.hbm %s2909_s4, 128 }
 0x8fc   :  { %p2429_p1 = scmp.ne.s32.totalorder %s2909_s4, %s2428_s7  ;;  %p2432_p2 = scmp.lt.u32.totalorder %s2428_s7, %s2909_s4 }
 0x8fe   :  { %p2434_p3 = pnand %p2432_p2, %p2429_p1 }
 0x900   :  { %2437 = shalt.err (!%p2434_p3)
}
 0x901   :  { %1656 = dma.vmem_to_hbm [thread:$0]  %s1654_s29, 128, %s2909_s4, [#allocation6]  }
 0x902   :  { %2442 = dma.done.wait [#allocation6], 128  }
 0x903   :  { %2443 = vsyncadd [#allocation6], 4294967168 }
 0x904   :  { %1660 = vsyncpa [#allocation5], 1 }
 0x905   :  { %1661 = vsyncpa [#allocation8], 1 }
 0x906   :  { %1662 = vsyncpa [#allocation6], 1 }

</bundles_post_ra>
